<compile_context>
chip_gen: v7x
topology: tpu7x:2x2x1
jax: 0.10.0
libtpu: 0.0.40
codegen_flags: <defaults>
</compile_context>

<pallas_src>
import jax
import jax.numpy as jnp
import numpy as np
from jax.experimental import pallas as pl
from jax.experimental.pallas import tpu as pltpu


# ------------------------------------------------------------ configuration --
VMEM_LIMIT_BYTES = 48 * 1024 * 1024       # < v7x 64 MiB physical; fine on v5e/v6e
VMEM_TILE_BUDGET = 20 * 1024 * 1024       # per-step refs; x2 double-buffer < limit


def _pick_coil_tile(C, N, n_coil_planes, n_single_planes):
    """Largest VMEM-fitting coil tile; prefer full C, then multiples of 8."""
    def fits(ct):
        return (n_coil_planes * ct + n_single_planes) * N * 4 <= VMEM_TILE_BUDGET

    if fits(C):
        return C
    divs = [d for d in range(1, C) if C % d == 0 and fits(d)]
    if not divs:
        return 1
    mult8 = [d for d in divs if d % 8 == 0]
    return max(mult8) if mult8 else max(divs)


def _cparams(sem):
    return pltpu.CompilerParams(dimension_semantics=sem,
                                vmem_limit_bytes=VMEM_LIMIT_BYTES)


# ------------------------------------------------------------------ kernels --
def _phase_coil_mul_kernel(d_ref, ar_ref, ai_ref, br_ref, bi_ref, or_ref, oi_ref):
    # out = d * a * b : d real (1,1,N); a complex (1,1,N) broadcast over coils;
    #                   b complex (1,Ct,N)
    d = d_ref[...]
    ar = ar_ref[...] * d
    ai = ai_ref[...] * d
    br = br_ref[...]
    bi = bi_ref[...]
    or_ref[...] = ar * br - ai * bi
    oi_ref[...] = ar * bi + ai * br


def _real_scale_kernel(w_ref, xr_ref, xi_ref, or_ref, oi_ref):
    # out = w * x : w real (1,1,N); x complex (1,Ct,N)
    w = w_ref[...]
    or_ref[...] = xr_ref[...] * w
    oi_ref[...] = xi_ref[...] * w


def _combine_conj_base_kernel(w_ref, br_ref, bi_ref, xr_ref, xi_ref,
                              cr_ref, ci_ref, or_ref, oi_ref):
    # out = base + sum_c  w * x * conj(cs)   (accumulated over coil-tile axis)
    @pl.when(pl.program_id(1) == 0)
    def _():
        or_ref[...] = br_ref[...]
        oi_ref[...] = bi_ref[...]

    xr, xi = xr_ref[...], xi_ref[...]
    cr, ci = cr_ref[...], ci_ref[...]
    sr = jnp.sum(xr * cr + xi * ci, axis=1, keepdims=True)   # coil reduce (XLU)
    si = jnp.sum(xi * cr - xr * ci, axis=1, keepdims=True)
    w = w_ref[...]                                           # applied after reduce
    or_ref[...] += w * sr
    oi_ref[...] += w * si


def _combine_conj_kernel(w_ref, xr_ref, xi_ref, cr_ref, ci_ref, or_ref, oi_ref):
    # out = sum_c  w * x * conj(cs)
    @pl.when(pl.program_id(1) == 0)
    def _():
        or_ref[...] = jnp.zeros_like(or_ref)
        oi_ref[...] = jnp.zeros_like(oi_ref)

    xr, xi = xr_ref[...], xi_ref[...]
    cr, ci = cr_ref[...], ci_ref[...]
    sr = jnp.sum(xr * cr + xi * ci, axis=1, keepdims=True)
    si = jnp.sum(xi * cr - xr * ci, axis=1, keepdims=True)
    w = w_ref[...]
    or_ref[...] += w * sr
    oi_ref[...] += w * si


def _add_coilsum_kernel(ar_ref, ai_ref, br_ref, bi_ref, or_ref, oi_ref):
    # out = sum_c (a + b)
    or_ref[...] = jnp.sum(ar_ref[...] + br_ref[...], axis=1, keepdims=True)
    oi_ref[...] = jnp.sum(ai_ref[...] + bi_ref[...], axis=1, keepdims=True)


# ----------------------------------------------------------------- wrappers --
def phase_coil_mul(d, ar, ai, br, bi):
    """d(1,1,N) * a(B,1,N) * b(B,C,N) complex product, broadcast over coils."""
    B, C, N = br.shape
    ct = _pick_coil_tile(C, N, n_coil_planes=4, n_single_planes=5)
    d_spec = pl.BlockSpec((1, 1, N), lambda b, c: (0, 0, 0))
    a_spec = pl.BlockSpec((1, 1, N), lambda b, c: (b, 0, 0))
    x_spec = pl.BlockSpec((1, ct, N), lambda b, c: (b, c, 0))
    return pl.pallas_call(
        _phase_coil_mul_kernel,
        out_shape=(jax.ShapeDtypeStruct((B, C, N), jnp.float32),) * 2,
        grid=(B, C // ct),
        in_specs=[d_spec, a_spec, a_spec, x_spec, x_spec],
        out_specs=(x_spec, x_spec),
        compiler_params=_cparams(("parallel", "parallel")),
    )(d, ar, ai, br, bi)


def real_scale(w, xr, xi):
    """(1,1,N) real weight times (B,C,N) complex planes."""
    B, C, N = xr.shape
    ct = _pick_coil_tile(C, N, n_coil_planes=4, n_single_planes=1)
    w_spec = pl.BlockSpec((1, 1, N), lambda b, c: (0, 0, 0))
    x_spec = pl.BlockSpec((1, ct, N), lambda b, c: (b, c, 0))
    return pl.pallas_call(
        _real_scale_kernel,
        out_shape=(jax.ShapeDtypeStruct((B, C, N), jnp.float32),) * 2,
        grid=(B, C // ct),
        in_specs=[w_spec, x_spec, x_spec],
        out_specs=(x_spec, x_spec),
        compiler_params=_cparams(("parallel", "parallel")),
    )(w, xr, xi)


def combine_conj_base(w, br, bi, xr, xi, cr, ci):
    """out(B,1,N) = base + sum_c w * x * conj(cs)."""
    B, C, N = xr.shape
    ct = _pick_coil_tile(C, N, n_coil_planes=4, n_single_planes=7)
    w_spec = pl.BlockSpec((1, 1, N), lambda b, c: (0, 0, 0))
    s_spec = pl.BlockSpec((1, 1, N), lambda b, c: (b, 0, 0))
    x_spec = pl.BlockSpec((1, ct, N), lambda b, c: (b, c, 0))
    return pl.pallas_call(
        _combine_conj_base_kernel,
        out_shape=(jax.ShapeDtypeStruct((B, 1, N), jnp.float32),) * 2,
        grid=(B, C // ct),
        in_specs=[w_spec, s_spec, s_spec, x_spec, x_spec, x_spec, x_spec],
        out_specs=(s_spec, s_spec),
        compiler_params=_cparams(("parallel", "arbitrary")),
    )(w, br, bi, xr, xi, cr, ci)


def combine_conj(w, xr, xi, cr, ci):
    """out(B,1,N) = sum_c w * x * conj(cs)."""
    B, C, N = xr.shape
    ct = _pick_coil_tile(C, N, n_coil_planes=4, n_single_planes=5)
    w_spec = pl.BlockSpec((1, 1, N), lambda b, c: (0, 0, 0))
    o_spec = pl.BlockSpec((1, 1, N), lambda b, c: (b, 0, 0))
    x_spec = pl.BlockSpec((1, ct, N), lambda b, c: (b, c, 0))
    return pl.pallas_call(
        _combine_conj_kernel,
        out_shape=(jax.ShapeDtypeStruct((B, 1, N), jnp.float32),) * 2,
        grid=(B, C // ct),
        in_specs=[w_spec, x_spec, x_spec, x_spec, x_spec],
        out_specs=(o_spec, o_spec),
        compiler_params=_cparams(("parallel", "arbitrary")),
    )(w, xr, xi, cr, ci)


def add_coilsum(ar, ai, br, bi):
    """out(B,1,N) = sum_c (a + b)."""
    B, C, N = ar.shape
    in_spec = pl.BlockSpec((1, C, N), lambda b: (b, 0, 0))
    out_spec = pl.BlockSpec((1, 1, N), lambda b: (b, 0, 0))
    return pl.pallas_call(
        _add_coilsum_kernel,
        out_shape=(jax.ShapeDtypeStruct((B, 1, N), jnp.float32),) * 2,
        grid=(B,),
        in_specs=[in_spec] * 4,
        out_specs=(out_spec, out_spec),
        compiler_params=_cparams(("parallel",)),
    )(ar, ai, br, bi)


# ------------------------------------------------------------------ modules --
class MaskSampler:
    """Cartesian mask sampler.  The mask lives in centered k-space coords."""

    def __init__(self, mask):
        self.mask = jnp.asarray(mask, jnp.float32)   # (H, W)

    # Complex-in / complex-out helpers kept for API compatibility; the Physics
    # hot path uses the fused plane-level kernels via self.mask directly.
    def apply_mask(self, k):
        B, C, H, W = k.shape
        N = H * W
        m = self.mask.reshape(1, 1, N)
        kr = jnp.real(k).astype(jnp.float32).reshape(B, C, N)
        ki = jnp.imag(k).astype(jnp.float32).reshape(B, C, N)
        orr, oii = real_scale(m, kr, ki)
        return jax.lax.complex(orr, oii).reshape(B, C, H, W)

    zero_fill = apply_mask


class Physics:
    def __init__(self, alpha=0.1, sampler=None, patch_size=320):
        self.alpha = float(alpha)
        self.sampler = sampler
        self.patch_size = patch_size
        self._const_cache = {}

    # forward == identity (as in the PyTorch module); no copy kernel needed.
    def forward(self, x):
        return x

    __call__ = forward

    # ---- centered FFT helpers (API compat / odd-dims fallback only) ---------
    def fourier_transform(self, img, dim=(-2, -1)):
        img = jnp.fft.ifftshift(img, axes=dim)
        k = jnp.fft.fftn(img, axes=dim, norm="ortho")
        return jnp.fft.fftshift(k, axes=dim)

    def inverse_fourier_transform(self, k, dim=(-2, -1)):
        k = jnp.fft.ifftshift(k, axes=dim)
        img = jnp.fft.ifftn(k, axes=dim, norm="ortho")
        return jnp.fft.fftshift(img, axes=dim)

    @staticmethod
    def _fft2(x):
        return jnp.fft.fftn(x, axes=(-2, -1), norm="ortho")

    @staticmethod
    def _ifft2(x):
        return jnp.fft.ifftn(x, axes=(-2, -1), norm="ortho")

    @staticmethod
    def extract_central_patch(x, patch_size=320):
        H, W = x.shape[-2], x.shape[-1]
        sx = (H - patch_size) // 2
        sy = (W - patch_size) // 2
        return x[..., sx:sx + patch_size, sy:sy + patch_size]

    # ---- precomputed fused-kernel constants ---------------------------------
    def _constants(self, H, W, P):
        key = (H, W, P)
        if key in self._const_cache:
            return self._const_cache[key]
        even = (H % 2 == 0) and (W % 2 == 0)
        if even:
            ii = jnp.arange(H, dtype=jnp.int32)[:, None]
            jj = jnp.arange(W, dtype=jnp.int32)[None, :]
            chk = (1.0 - 2.0 * ((ii + jj) % 2)).astype(jnp.float32)      # (-1)^(i+j)
            s = 1.0 if ((H // 2 + W // 2) % 2 == 0) else -1.0
            sx, sy = (H - P) // 2, (W - P) // 2
            ip = jnp.arange(P, dtype=jnp.int32)[:, None]
            jp = jnp.arange(P, dtype=jnp.int32)[None, :]
            chk_p = (1.0 - 2.0 * ((ip + jp) % 2)).astype(jnp.float32)
            sign_p = s * (1.0 if ((sx + sy) % 2 == 0) else -1.0)
        else:
            chk = jnp.ones((H, W), jnp.float32)
            chk_p = jnp.ones((P, P), jnp.float32)
            sign_p = 1.0
        mask = self.sampler.mask.astype(jnp.float32)
        d_img = chk.reshape(1, 1, H * W)
        mask_flat = mask.reshape(1, 1, H * W)
        mask_dk = (mask * chk).reshape(1, 1, H * W)
        w_S = (-self.alpha) * d_img
        w_W = (self.alpha * sign_p) * chk_p.reshape(1, 1, P * P)
        out = (even, d_img, mask_flat, mask_dk, w_S, w_W)
        self._const_cache[key] = out
        return out

    # ---- S = C_k - alpha * E^H(E(C_k)) --------------------------------------
    def _compute_S(self, C_k, Cs):
        B, C, H, W = Cs.shape
        N = H * W
        even, d_img, mask_flat, _, w_S, _ = self._constants(H, W, self.patch_size)

        ckr = jnp.real(C_k).astype(jnp.float32).reshape(B, 1, N)
        cki = jnp.imag(C_k).astype(jnp.float32).reshape(B, 1, N)
        csr = jnp.real(Cs).astype(jnp.float32).reshape(B, C, N)
        csi = jnp.imag(Cs).astype(jnp.float32).reshape(B, C, N)

        # fused checkerboard phase + coil-expand multiply
        xr, xi = phase_coil_mul(d_img, ckr, cki, csr, csi)

        cx = jax.lax.complex(xr, xi).reshape(B, C, H, W)
        CF = self._fft2(cx) if even else self.fourier_transform(cx)
        kr = jnp.real(CF).astype(jnp.float32).reshape(B, C, N)
        ki = jnp.imag(CF).astype(jnp.float32).reshape(B, C, N)

        # sampling mask (the k-space checkerboards cancel between FFT and IFFT)
        mr, mi = real_scale(mask_flat, kr, ki)

        mz = jax.lax.complex(mr, mi).reshape(B, C, H, W)
        u = self._ifft2(mz) if even else self.inverse_fourier_transform(mz)
        ur = jnp.real(u).astype(jnp.float32).reshape(B, C, N)
        ui = jnp.imag(u).astype(jnp.float32).reshape(B, C, N)

        # fused: S = C_k - alpha * sum_c  D .* u .* conj(Cs)
        Sr, Si = combine_conj_base(w_S, ckr, cki, ur, ui, csr, csi)
        return Sr.reshape(B, 1, H, W), Si.reshape(B, 1, H, W)

    # ---- W_e = alpha * E^H(undersampled_ksp) --------------------------------
    def _compute_W_e(self, undersampled_ksp, Cs):
        B, C, H, W = undersampled_ksp.shape
        N = H * W
        P = self.patch_size
        even, _, _, mask_dk, _, w_W = self._constants(H, W, P)

        ur = jnp.real(undersampled_ksp).astype(jnp.float32).reshape(B, C, N)
        ui = jnp.imag(undersampled_ksp).astype(jnp.float32).reshape(B, C, N)

        # fused zero-fill mask * pre-IFFT checkerboard phase (single pass)
        zr, zi = real_scale(mask_dk, ur, ui)

        zc = jax.lax.complex(zr, zi).reshape(B, C, H, W)
        img = self._ifft2(zc) if even else self.inverse_fourier_transform(zc)
        img = self.extract_central_patch(img, P)
        pr = jnp.real(img).astype(jnp.float32).reshape(B, C, P * P)
        pi = jnp.imag(img).astype(jnp.float32).reshape(B, C, P * P)

        csr = jnp.real(Cs).astype(jnp.float32).reshape(B, C, P * P)
        csi = jnp.imag(Cs).astype(jnp.float32).reshape(B, C, P * P)

        # fused: W_e = alpha * sum_c (sign * D) .* img .* conj(Cs)
        Wr, Wi = combine_conj(w_W, pr, pi, csr, csi)
        return Wr.reshape(B, 1, P, P), Wi.reshape(B, 1, P, P)

    # ---- combined = sum_{dim=-3} (S + W_e) ----------------------------------
    def _final_sum(self, S_planes, W_e_planes):
        Sr, Si = S_planes
        Wr, Wi = W_e_planes
        B, Cc, H, W = Sr.shape
        N = H * W
        outr, outi = add_coilsum(Sr.reshape(B, Cc, N), Si.reshape(B, Cc, N),
                                 Wr.reshape(B, Cc, N), Wi.reshape(B, Cc, N))
        return jax.lax.complex(outr, outi).reshape(B, 1, H, W)


# --------------------------------------------------------------------- main --
if __name__ == "__main__":
    B, C, H, W = 2, 4, 16, 16
    key = jax.random.PRNGKey(0)
    k1, k2, k3, k4, k5, k6, k7 = jax.random.split(key, 7)

    C_k = jax.lax.complex(jax.random.normal(k1, (B, 1, H, W), jnp.float32),
                          jax.random.normal(k2, (B, 1, H, W), jnp.float32))
    Cs = jax.lax.complex(jax.random.normal(k3, (B, C, H, W), jnp.float32),
                         jax.random.normal(k4, (B, C, H, W), jnp.float32))
    us_ksp = jax.lax.complex(jax.random.normal(k5, (B, C, H, W), jnp.float32),
                             jax.random.normal(k6, (B, C, H, W), jnp.float32))
    x_img = jax.random.normal(k7, (B, C, H, W), jnp.float32)

    # deterministic sampling mask: every other column + 4 center columns
    mask = jnp.zeros((H, W), jnp.float32)
    mask = mask.at[:, ::2].set(1.0)
    mask = mask.at[:, W // 2 - 2:W // 2 + 2].set(1.0)

    phys = Physics(alpha=0.1, sampler=MaskSampler(mask), patch_size=H)

    # forward pass (identity semantics of the PyTorch module)
    y = phys.forward(x_img)

    # full data-consistency step (jitted so the complex<->plane glue fuses)
    @jax.jit
    def dc_step(C_k, Cs, us_ksp):
        S = phys._compute_S(C_k, Cs)
        W_e = phys._compute_W_e(us_ksp, Cs)
        return phys._final_sum(S, W_e)

    out = jax.block_until_ready(dc_step(C_k, Cs, us_ksp))

    # ---------------- pure-JAX reference (mirrors the torch code) ------------
    def ft(img):
        img = jnp.fft.ifftshift(img, axes=(-2, -1))
        return jnp.fft.fftshift(
            jnp.fft.fftn(img, axes=(-2, -1), norm="ortho"), axes=(-2, -1))

    def ift(k):
        k = jnp.fft.ifftshift(k, axes=(-2, -1))
        return jnp.fft.fftshift(
            jnp.fft.ifftn(k, axes=(-2, -1), norm="ortho"), axes=(-2, -1))

    alpha = 0.1
    Cs_conj = jnp.conj(Cs)
    Eh_S = jnp.sum(ift(mask * ft(C_k * Cs)) * Cs_conj, axis=-3, keepdims=True)
    S_ref = C_k - alpha * Eh_S
    Eh_W = jnp.sum(ift(mask * us_ksp) * Cs_conj, axis=-3, keepdims=True)
    W_ref = alpha * Eh_W
    out_ref = jnp.sum(S_ref + W_ref, axis=-3, keepdims=True)

    assert np.allclose(np.asarray(y), np.asarray(x_img)), "forward mismatch"
    assert np.allclose(np.asarray(out), np.asarray(out_ref),
                       rtol=1e-4, atol=1e-4), "physics step mismatch"
    print("KERNEL_OK")
</pallas_src>

<mosaic_0001>
module attributes {stable_mosaic.version = 11 : i64} {
  func.func @_phase_coil_mul_kernel(%arg0: i32, %arg1: i32, %arg2: memref<1x1x256xf32, #tpu.memory_space<vmem>>, %arg3: memref<1x1x256xf32, #tpu.memory_space<vmem>>, %arg4: memref<1x1x256xf32, #tpu.memory_space<vmem>>, %arg5: memref<1x4x256xf32, #tpu.memory_space<vmem>>, %arg6: memref<1x4x256xf32, #tpu.memory_space<vmem>>, %arg7: memref<1x4x256xf32, #tpu.memory_space<vmem>>, %arg8: memref<1x4x256xf32, #tpu.memory_space<vmem>>) attributes {dimension_semantics = [#tpu.dimension_semantics<parallel>, #tpu.dimension_semantics<parallel>], iteration_bounds = array<i64: 2, 1>, scalar_prefetch = 0 : i64, scratch_operands = 0 : i64, tpu.core_type = #tpu.core_type<tc>, window_params = [{pipeline_mode = #tpu.pipeline_mode<synchronous>, transform_indices = @transform_0, window_bounds = array<i64: 1, 1, 256>}, {transform_indices = @transform_1, window_bounds = array<i64: 1, 1, 256>}, {transform_indices = @transform_2, window_bounds = array<i64: 1, 1, 256>}, {transform_indices = @transform_3, window_bounds = array<i64: 1, 4, 256>}, {transform_indices = @transform_4, window_bounds = array<i64: 1, 4, 256>}, {transform_indices = @transform_5, window_bounds = array<i64: 1, 4, 256>}, {transform_indices = @transform_6, window_bounds = array<i64: 1, 4, 256>}]} {
    %c0 = arith.constant 0 : index
    %c0_0 = arith.constant 0 : index
    %c0_1 = arith.constant 0 : index
    %0 = vector.load %arg2[%c0, %c0_0, %c0_1] : memref<1x1x256xf32, #tpu.memory_space<vmem>>, vector<1x1x256xf32>
    %c0_2 = arith.constant 0 : index
    %c0_3 = arith.constant 0 : index
    %c0_4 = arith.constant 0 : index
    %1 = vector.load %arg3[%c0_2, %c0_3, %c0_4] : memref<1x1x256xf32, #tpu.memory_space<vmem>>, vector<1x1x256xf32>
    %2 = arith.mulf %1, %0 : vector<1x1x256xf32>
    %c0_5 = arith.constant 0 : index
    %c0_6 = arith.constant 0 : index
    %c0_7 = arith.constant 0 : index
    %3 = vector.load %arg4[%c0_5, %c0_6, %c0_7] : memref<1x1x256xf32, #tpu.memory_space<vmem>>, vector<1x1x256xf32>
    %4 = arith.mulf %3, %0 : vector<1x1x256xf32>
    %c0_8 = arith.constant 0 : index
    %c0_9 = arith.constant 0 : index
    %c0_10 = arith.constant 0 : index
    %5 = vector.load %arg5[%c0_8, %c0_9, %c0_10] : memref<1x4x256xf32, #tpu.memory_space<vmem>>, vector<1x4x256xf32>
    %c0_11 = arith.constant 0 : index
    %c0_12 = arith.constant 0 : index
    %c0_13 = arith.constant 0 : index
    %6 = vector.load %arg6[%c0_11, %c0_12, %c0_13] : memref<1x4x256xf32, #tpu.memory_space<vmem>>, vector<1x4x256xf32>
    %7 = vector.broadcast %2 : vector<1x1x256xf32> to vector<1x4x256xf32>
    %8 = arith.mulf %7, %5 : vector<1x4x256xf32>
    %9 = vector.broadcast %4 : vector<1x1x256xf32> to vector<1x4x256xf32>
    %10 = arith.mulf %9, %6 : vector<1x4x256xf32>
    %11 = arith.subf %8, %10 : vector<1x4x256xf32>
    %c0_14 = arith.constant 0 : index
    %c0_15 = arith.constant 0 : index
    %c0_16 = arith.constant 0 : index
    %12 = vector.load %arg7[%c0_14, %c0_15, %c0_16] : memref<1x4x256xf32, #tpu.memory_space<vmem>>, vector<1x4x256xf32>
    tpu.vector_store %arg7[%c0_14, %c0_15, %c0_16], %11 {strides = array<i32>} : memref<1x4x256xf32, #tpu.memory_space<vmem>>, vector<1x4x256xf32>,
    %13 = vector.broadcast %2 : vector<1x1x256xf32> to vector<1x4x256xf32>
    %14 = arith.mulf %13, %6 : vector<1x4x256xf32>
    %15 = vector.broadcast %4 : vector<1x1x256xf32> to vector<1x4x256xf32>
    %16 = arith.mulf %15, %5 : vector<1x4x256xf32>
    %17 = arith.addf %14, %16 : vector<1x4x256xf32>
    %c0_17 = arith.constant 0 : index
    %c0_18 = arith.constant 0 : index
    %c0_19 = arith.constant 0 : index
    %18 = vector.load %arg8[%c0_17, %c0_18, %c0_19] : memref<1x4x256xf32, #tpu.memory_space<vmem>>, vector<1x4x256xf32>
    tpu.vector_store %arg8[%c0_17, %c0_18, %c0_19], %17 {strides = array<i32>} : memref<1x4x256xf32, #tpu.memory_space<vmem>>, vector<1x4x256xf32>,
    return
  }
  func.func @transform_0(%arg0: i32, %arg1: i32) -> (i32, i32, i32) {
    %c0_i32 = arith.constant 0 : i32
    %c0_i32_0 = arith.constant 0 : i32
    %c0_i32_1 = arith.constant 0 : i32
    %c0_i32_2 = arith.constant 0 : i32
    return %c0_i32, %c0_i32_0, %c0_i32_1 : i32, i32, i32
  }
  func.func @transform_1(%arg0: i32, %arg1: i32) -> (i32, i32, i32) {
    %c0_i32 = arith.constant 0 : i32
    %c0_i32_0 = arith.constant 0 : i32
    %c0_i32_1 = arith.constant 0 : i32
    return %arg0, %c0_i32, %c0_i32_0 : i32, i32, i32
  }
  func.func @transform_2(%arg0: i32, %arg1: i32) -> (i32, i32, i32) {
    %c0_i32 = arith.constant 0 : i32
    %c0_i32_0 = arith.constant 0 : i32
    %c0_i32_1 = arith.constant 0 : i32
    return %arg0, %c0_i32, %c0_i32_0 : i32, i32, i32
  }
  func.func @transform_3(%arg0: i32, %arg1: i32) -> (i32, i32, i32) {
    %c0_i32 = arith.constant 0 : i32
    %c0_i32_0 = arith.constant 0 : i32
    return %arg0, %arg1, %c0_i32 : i32, i32, i32
  }
  func.func @transform_4(%arg0: i32, %arg1: i32) -> (i32, i32, i32) {
    %c0_i32 = arith.constant 0 : i32
    %c0_i32_0 = arith.constant 0 : i32
    return %arg0, %arg1, %c0_i32 : i32, i32, i32
  }
  func.func @transform_5(%arg0: i32, %arg1: i32) -> (i32, i32, i32) {
    %c0_i32 = arith.constant 0 : i32
    %c0_i32_0 = arith.constant 0 : i32
    return %arg0, %arg1, %c0_i32 : i32, i32, i32
  }
  func.func @transform_6(%arg0: i32, %arg1: i32) -> (i32, i32, i32) {
    %c0_i32 = arith.constant 0 : i32
    %c0_i32_0 = arith.constant 0 : i32
    return %arg0, %arg1, %c0_i32 : i32, i32, i32
  }
}

module attributes {stable_mosaic.version = 11 : i64} {
  func.func @_real_scale_kernel(%arg0: i32, %arg1: i32, %arg2: memref<1x1x256xf32, #tpu.memory_space<vmem>>, %arg3: memref<1x4x256xf32, #tpu.memory_space<vmem>>, %arg4: memref<1x4x256xf32, #tpu.memory_space<vmem>>, %arg5: memref<1x4x256xf32, #tpu.memory_space<vmem>>, %arg6: memref<1x4x256xf32, #tpu.memory_space<vmem>>) attributes {dimension_semantics = [#tpu.dimension_semantics<parallel>, #tpu.dimension_semantics<parallel>], iteration_bounds = array<i64: 2, 1>, scalar_prefetch = 0 : i64, scratch_operands = 0 : i64, tpu.core_type = #tpu.core_type<tc>, window_params = [{pipeline_mode = #tpu.pipeline_mode<synchronous>, transform_indices = @transform_0, window_bounds = array<i64: 1, 1, 256>}, {transform_indices = @transform_1, window_bounds = array<i64: 1, 4, 256>}, {transform_indices = @transform_2, window_bounds = array<i64: 1, 4, 256>}, {transform_indices = @transform_3, window_bounds = array<i64: 1, 4, 256>}, {transform_indices = @transform_4, window_bounds = array<i64: 1, 4, 256>}]} {
    %c0 = arith.constant 0 : index
    %c0_0 = arith.constant 0 : index
    %c0_1 = arith.constant 0 : index
    %0 = vector.load %arg2[%c0, %c0_0, %c0_1] : memref<1x1x256xf32, #tpu.memory_space<vmem>>, vector<1x1x256xf32>
    %c0_2 = arith.constant 0 : index
    %c0_3 = arith.constant 0 : index
    %c0_4 = arith.constant 0 : index
    %1 = vector.load %arg3[%c0_2, %c0_3, %c0_4] : memref<1x4x256xf32, #tpu.memory_space<vmem>>, vector<1x4x256xf32>
    %2 = vector.broadcast %0 : vector<1x1x256xf32> to vector<1x4x256xf32>
    %3 = arith.mulf %1, %2 : vector<1x4x256xf32>
    %c0_5 = arith.constant 0 : index
    %c0_6 = arith.constant 0 : index
    %c0_7 = arith.constant 0 : index
    %4 = vector.load %arg5[%c0_5, %c0_6, %c0_7] : memref<1x4x256xf32, #tpu.memory_space<vmem>>, vector<1x4x256xf32>
    tpu.vector_store %arg5[%c0_5, %c0_6, %c0_7], %3 {strides = array<i32>} : memref<1x4x256xf32, #tpu.memory_space<vmem>>, vector<1x4x256xf32>,
    %c0_8 = arith.constant 0 : index
    %c0_9 = arith.constant 0 : index
    %c0_10 = arith.constant 0 : index
    %5 = vector.load %arg4[%c0_8, %c0_9, %c0_10] : memref<1x4x256xf32, #tpu.memory_space<vmem>>, vector<1x4x256xf32>
    %6 = vector.broadcast %0 : vector<1x1x256xf32> to vector<1x4x256xf32>
    %7 = arith.mulf %5, %6 : vector<1x4x256xf32>
    %c0_11 = arith.constant 0 : index
    %c0_12 = arith.constant 0 : index
    %c0_13 = arith.constant 0 : index
    %8 = vector.load %arg6[%c0_11, %c0_12, %c0_13] : memref<1x4x256xf32, #tpu.memory_space<vmem>>, vector<1x4x256xf32>
    tpu.vector_store %arg6[%c0_11, %c0_12, %c0_13], %7 {strides = array<i32>} : memref<1x4x256xf32, #tpu.memory_space<vmem>>, vector<1x4x256xf32>,
    return
  }
  func.func @transform_0(%arg0: i32, %arg1: i32) -> (i32, i32, i32) {
    %c0_i32 = arith.constant 0 : i32
    %c0_i32_0 = arith.constant 0 : i32
    %c0_i32_1 = arith.constant 0 : i32
    %c0_i32_2 = arith.constant 0 : i32
    return %c0_i32, %c0_i32_0, %c0_i32_1 : i32, i32, i32
  }
  func.func @transform_1(%arg0: i32, %arg1: i32) -> (i32, i32, i32) {
    %c0_i32 = arith.constant 0 : i32
    %c0_i32_0 = arith.constant 0 : i32
    return %arg0, %arg1, %c0_i32 : i32, i32, i32
  }
  func.func @transform_2(%arg0: i32, %arg1: i32) -> (i32, i32, i32) {
    %c0_i32 = arith.constant 0 : i32
    %c0_i32_0 = arith.constant 0 : i32
    return %arg0, %arg1, %c0_i32 : i32, i32, i32
  }
  func.func @transform_3(%arg0: i32, %arg1: i32) -> (i32, i32, i32) {
    %c0_i32 = arith.constant 0 : i32
    %c0_i32_0 = arith.constant 0 : i32
    return %arg0, %arg1, %c0_i32 : i32, i32, i32
  }
  func.func @transform_4(%arg0: i32, %arg1: i32) -> (i32, i32, i32) {
    %c0_i32 = arith.constant 0 : i32
    %c0_i32_0 = arith.constant 0 : i32
    return %arg0, %arg1, %c0_i32 : i32, i32, i32
  }
}

module attributes {stable_mosaic.version = 11 : i64} {
  func.func @_combine_conj_kernel(%arg0: i32, %arg1: i32, %arg2: memref<1x1x256xf32, #tpu.memory_space<vmem>>, %arg3: memref<1x4x256xf32, #tpu.memory_space<vmem>>, %arg4: memref<1x4x256xf32, #tpu.memory_space<vmem>>, %arg5: memref<1x4x256xf32, #tpu.memory_space<vmem>>, %arg6: memref<1x4x256xf32, #tpu.memory_space<vmem>>, %arg7: memref<1x1x256xf32, #tpu.memory_space<vmem>>, %arg8: memref<1x1x256xf32, #tpu.memory_space<vmem>>) attributes {dimension_semantics = [#tpu.dimension_semantics<parallel>, #tpu.dimension_semantics<arbitrary>], iteration_bounds = array<i64: 2, 1>, scalar_prefetch = 0 : i64, scratch_operands = 0 : i64, tpu.core_type = #tpu.core_type<tc>, window_params = [{pipeline_mode = #tpu.pipeline_mode<synchronous>, transform_indices = @transform_0, window_bounds = array<i64: 1, 1, 256>}, {transform_indices = @transform_1, window_bounds = array<i64: 1, 4, 256>}, {transform_indices = @transform_2, window_bounds = array<i64: 1, 4, 256>}, {transform_indices = @transform_3, window_bounds = array<i64: 1, 4, 256>}, {transform_indices = @transform_4, window_bounds = array<i64: 1, 4, 256>}, {transform_indices = @transform_5, window_bounds = array<i64: 1, 1, 256>}, {transform_indices = @transform_6, window_bounds = array<i64: 1, 1, 256>}]} {
    %c0_i32 = arith.constant 0 : i32
    %0 = arith.cmpi eq, %arg1, %c0_i32 : i32
    %1 = arith.extui %0 : i1 to i32
    %c0_i32_0 = arith.constant 0 : i32
    %2 = arith.cmpi ne, %1, %c0_i32_0 : i32
    scf.if %2 {
      %cst_28 = arith.constant 0.000000e+00 : f32
      %26 = vector.broadcast %cst_28 : f32 to vector<1x1x256xf32>
      %c0_29 = arith.constant 0 : index
      %c0_30 = arith.constant 0 : index
      %c0_31 = arith.constant 0 : index
      %27 = vector.load %arg7[%c0_29, %c0_30, %c0_31] : memref<1x1x256xf32, #tpu.memory_space<vmem>>, vector<1x1x256xf32>
      tpu.vector_store %arg7[%c0_29, %c0_30, %c0_31], %26 {strides = array<i32>} : memref<1x1x256xf32, #tpu.memory_space<vmem>>, vector<1x1x256xf32>,
      %cst_32 = arith.constant 0.000000e+00 : f32
      %28 = vector.broadcast %cst_32 : f32 to vector<1x1x256xf32>
      %c0_33 = arith.constant 0 : index
      %c0_34 = arith.constant 0 : index
      %c0_35 = arith.constant 0 : index
      %29 = vector.load %arg8[%c0_33, %c0_34, %c0_35] : memref<1x1x256xf32, #tpu.memory_space<vmem>>, vector<1x1x256xf32>
      tpu.vector_store %arg8[%c0_33, %c0_34, %c0_35], %28 {strides = array<i32>} : memref<1x1x256xf32, #tpu.memory_space<vmem>>, vector<1x1x256xf32>,
    } else {
    }
    %c0 = arith.constant 0 : index
    %c0_1 = arith.constant 0 : index
    %c0_2 = arith.constant 0 : index
    %3 = vector.load %arg3[%c0, %c0_1, %c0_2] : memref<1x4x256xf32, #tpu.memory_space<vmem>>, vector<1x4x256xf32>
    %c0_3 = arith.constant 0 : index
    %c0_4 = arith.constant 0 : index
    %c0_5 = arith.constant 0 : index
    %4 = vector.load %arg4[%c0_3, %c0_4, %c0_5] : memref<1x4x256xf32, #tpu.memory_space<vmem>>, vector<1x4x256xf32>
    %c0_6 = arith.constant 0 : index
    %c0_7 = arith.constant 0 : index
    %c0_8 = arith.constant 0 : index
    %5 = vector.load %arg5[%c0_6, %c0_7, %c0_8] : memref<1x4x256xf32, #tpu.memory_space<vmem>>, vector<1x4x256xf32>
    %c0_9 = arith.constant 0 : index
    %c0_10 = arith.constant 0 : index
    %c0_11 = arith.constant 0 : index
    %6 = vector.load %arg6[%c0_9, %c0_10, %c0_11] : memref<1x4x256xf32, #tpu.memory_space<vmem>>, vector<1x4x256xf32>
    %7 = arith.mulf %3, %5 : vector<1x4x256xf32>
    %8 = arith.mulf %4, %6 : vector<1x4x256xf32>
    %9 = arith.addf %7, %8 : vector<1x4x256xf32>
    %cst = arith.constant dense<0.000000e+00> : vector<1x256xf32>
    %10 = vector.multi_reduction <add>, %9, %cst [1] : vector<1x4x256xf32> to vector<1x256xf32>
    %11 = vector.shape_cast %10 : vector<1x256xf32> to vector<1x1x256xf32>
    %12 = arith.mulf %4, %5 : vector<1x4x256xf32>
    %13 = arith.mulf %3, %6 : vector<1x4x256xf32>
    %14 = arith.subf %12, %13 : vector<1x4x256xf32>
    %cst_12 = arith.constant dense<0.000000e+00> : vector<1x256xf32>
    %15 = vector.multi_reduction <add>, %14, %cst_12 [1] : vector<1x4x256xf32> to vector<1x256xf32>
    %16 = vector.shape_cast %15 : vector<1x256xf32> to vector<1x1x256xf32>
    %c0_13 = arith.constant 0 : index
    %c0_14 = arith.constant 0 : index
    %c0_15 = arith.constant 0 : index
    %17 = vector.load %arg2[%c0_13, %c0_14, %c0_15] : memref<1x1x256xf32, #tpu.memory_space<vmem>>, vector<1x1x256xf32>
    %c0_16 = arith.constant 0 : index
    %c0_17 = arith.constant 0 : index
    %c0_18 = arith.constant 0 : index
    %18 = vector.load %arg7[%c0_16, %c0_17, %c0_18] : memref<1x1x256xf32, #tpu.memory_space<vmem>>, vector<1x1x256xf32>
    %19 = arith.mulf %17, %11 : vector<1x1x256xf32>
    %20 = arith.addf %18, %19 : vector<1x1x256xf32>
    %c0_19 = arith.constant 0 : index
    %c0_20 = arith.constant 0 : index
    %c0_21 = arith.constant 0 : index
    %21 = vector.load %arg7[%c0_19, %c0_20, %c0_21] : memref<1x1x256xf32, #tpu.memory_space<vmem>>, vector<1x1x256xf32>
    tpu.vector_store %arg7[%c0_19, %c0_20, %c0_21], %20 {strides = array<i32>} : memref<1x1x256xf32, #tpu.memory_space<vmem>>, vector<1x1x256xf32>,
    %c0_22 = arith.constant 0 : index
    %c0_23 = arith.constant 0 : index
    %c0_24 = arith.constant 0 : index
    %22 = vector.load %arg8[%c0_22, %c0_23, %c0_24] : memref<1x1x256xf32, #tpu.memory_space<vmem>>, vector<1x1x256xf32>
    %23 = arith.mulf %17, %16 : vector<1x1x256xf32>
    %24 = arith.addf %22, %23 : vector<1x1x256xf32>
    %c0_25 = arith.constant 0 : index
    %c0_26 = arith.constant 0 : index
    %c0_27 = arith.constant 0 : index
    %25 = vector.load %arg8[%c0_25, %c0_26, %c0_27] : memref<1x1x256xf32, #tpu.memory_space<vmem>>, vector<1x1x256xf32>
    tpu.vector_store %arg8[%c0_25, %c0_26, %c0_27], %24 {strides = array<i32>} : memref<1x1x256xf32, #tpu.memory_space<vmem>>, vector<1x1x256xf32>,
    return
  }
  func.func @transform_0(%arg0: i32, %arg1: i32) -> (i32, i32, i32) {
    %c0_i32 = arith.constant 0 : i32
    %c0_i32_0 = arith.constant 0 : i32
    %c0_i32_1 = arith.constant 0 : i32
    %c0_i32_2 = arith.constant 0 : i32
    return %c0_i32, %c0_i32_0, %c0_i32_1 : i32, i32, i32
  }
  func.func @transform_1(%arg0: i32, %arg1: i32) -> (i32, i32, i32) {
    %c0_i32 = arith.constant 0 : i32
    %c0_i32_0 = arith.constant 0 : i32
    return %arg0, %arg1, %c0_i32 : i32, i32, i32
  }
  func.func @transform_2(%arg0: i32, %arg1: i32) -> (i32, i32, i32) {
    %c0_i32 = arith.constant 0 : i32
    %c0_i32_0 = arith.constant 0 : i32
    return %arg0, %arg1, %c0_i32 : i32, i32, i32
  }
  func.func @transform_3(%arg0: i32, %arg1: i32) -> (i32, i32, i32) {
    %c0_i32 = arith.constant 0 : i32
    %c0_i32_0 = arith.constant 0 : i32
    return %arg0, %arg1, %c0_i32 : i32, i32, i32
  }
  func.func @transform_4(%arg0: i32, %arg1: i32) -> (i32, i32, i32) {
    %c0_i32 = arith.constant 0 : i32
    %c0_i32_0 = arith.constant 0 : i32
    return %arg0, %arg1, %c0_i32 : i32, i32, i32
  }
  func.func @transform_5(%arg0: i32, %arg1: i32) -> (i32, i32, i32) {
    %c0_i32 = arith.constant 0 : i32
    %c0_i32_0 = arith.constant 0 : i32
    %c0_i32_1 = arith.constant 0 : i32
    return %arg0, %c0_i32, %c0_i32_0 : i32, i32, i32
  }
  func.func @transform_6(%arg0: i32, %arg1: i32) -> (i32, i32, i32) {
    %c0_i32 = arith.constant 0 : i32
    %c0_i32_0 = arith.constant 0 : i32
    %c0_i32_1 = arith.constant 0 : i32
    return %arg0, %c0_i32, %c0_i32_0 : i32, i32, i32
  }
}

module attributes {stable_mosaic.version = 11 : i64} {
  func.func @_combine_conj_base_kernel(%arg0: i32, %arg1: i32, %arg2: memref<1x1x256xf32, #tpu.memory_space<vmem>>, %arg3: memref<1x1x256xf32, #tpu.memory_space<vmem>>, %arg4: memref<1x1x256xf32, #tpu.memory_space<vmem>>, %arg5: memref<1x4x256xf32, #tpu.memory_space<vmem>>, %arg6: memref<1x4x256xf32, #tpu.memory_space<vmem>>, %arg7: memref<1x4x256xf32, #tpu.memory_space<vmem>>, %arg8: memref<1x4x256xf32, #tpu.memory_space<vmem>>, %arg9: memref<1x1x256xf32, #tpu.memory_space<vmem>>, %arg10: memref<1x1x256xf32, #tpu.memory_space<vmem>>) attributes {dimension_semantics = [#tpu.dimension_semantics<parallel>, #tpu.dimension_semantics<arbitrary>], iteration_bounds = array<i64: 2, 1>, scalar_prefetch = 0 : i64, scratch_operands = 0 : i64, tpu.core_type = #tpu.core_type<tc>, window_params = [{pipeline_mode = #tpu.pipeline_mode<synchronous>, transform_indices = @transform_0, window_bounds = array<i64: 1, 1, 256>}, {transform_indices = @transform_1, window_bounds = array<i64: 1, 1, 256>}, {transform_indices = @transform_2, window_bounds = array<i64: 1, 1, 256>}, {transform_indices = @transform_3, window_bounds = array<i64: 1, 4, 256>}, {transform_indices = @transform_4, window_bounds = array<i64: 1, 4, 256>}, {transform_indices = @transform_5, window_bounds = array<i64: 1, 4, 256>}, {transform_indices = @transform_6, window_bounds = array<i64: 1, 4, 256>}, {transform_indices = @transform_7, window_bounds = array<i64: 1, 1, 256>}, {transform_indices = @transform_8, window_bounds = array<i64: 1, 1, 256>}]} {
    %c0_i32 = arith.constant 0 : i32
    %0 = arith.cmpi eq, %arg1, %c0_i32 : i32
    %1 = arith.extui %0 : i1 to i32
    %c0_i32_0 = arith.constant 0 : i32
    %2 = arith.cmpi ne, %1, %c0_i32_0 : i32
    scf.if %2 {
      %c0_28 = arith.constant 0 : index
      %c0_29 = arith.constant 0 : index
      %c0_30 = arith.constant 0 : index
      %26 = vector.load %arg3[%c0_28, %c0_29, %c0_30] : memref<1x1x256xf32, #tpu.memory_space<vmem>>, vector<1x1x256xf32>
      %c0_31 = arith.constant 0 : index
      %c0_32 = arith.constant 0 : index
      %c0_33 = arith.constant 0 : index
      %27 = vector.load %arg9[%c0_31, %c0_32, %c0_33] : memref<1x1x256xf32, #tpu.memory_space<vmem>>, vector<1x1x256xf32>
      tpu.vector_store %arg9[%c0_31, %c0_32, %c0_33], %26 {strides = array<i32>} : memref<1x1x256xf32, #tpu.memory_space<vmem>>, vector<1x1x256xf32>,
      %c0_34 = arith.constant 0 : index
      %c0_35 = arith.constant 0 : index
      %c0_36 = arith.constant 0 : index
      %28 = vector.load %arg4[%c0_34, %c0_35, %c0_36] : memref<1x1x256xf32, #tpu.memory_space<vmem>>, vector<1x1x256xf32>
      %c0_37 = arith.constant 0 : index
      %c0_38 = arith.constant 0 : index
      %c0_39 = arith.constant 0 : index
      %29 = vector.load %arg10[%c0_37, %c0_38, %c0_39] : memref<1x1x256xf32, #tpu.memory_space<vmem>>, vector<1x1x256xf32>
      tpu.vector_store %arg10[%c0_37, %c0_38, %c0_39], %28 {strides = array<i32>} : memref<1x1x256xf32, #tpu.memory_space<vmem>>, vector<1x1x256xf32>,
    } else {
    }
    %c0 = arith.constant 0 : index
    %c0_1 = arith.constant 0 : index
    %c0_2 = arith.constant 0 : index
    %3 = vector.load %arg5[%c0, %c0_1, %c0_2] : memref<1x4x256xf32, #tpu.memory_space<vmem>>, vector<1x4x256xf32>
    %c0_3 = arith.constant 0 : index
    %c0_4 = arith.constant 0 : index
    %c0_5 = arith.constant 0 : index
    %4 = vector.load %arg6[%c0_3, %c0_4, %c0_5] : memref<1x4x256xf32, #tpu.memory_space<vmem>>, vector<1x4x256xf32>
    %c0_6 = arith.constant 0 : index
    %c0_7 = arith.constant 0 : index
    %c0_8 = arith.constant 0 : index
    %5 = vector.load %arg7[%c0_6, %c0_7, %c0_8] : memref<1x4x256xf32, #tpu.memory_space<vmem>>, vector<1x4x256xf32>
    %c0_9 = arith.constant 0 : index
    %c0_10 = arith.constant 0 : index
    %c0_11 = arith.constant 0 : index
    %6 = vector.load %arg8[%c0_9, %c0_10, %c0_11] : memref<1x4x256xf32, #tpu.memory_space<vmem>>, vector<1x4x256xf32>
    %7 = arith.mulf %3, %5 : vector<1x4x256xf32>
    %8 = arith.mulf %4, %6 : vector<1x4x256xf32>
    %9 = arith.addf %7, %8 : vector<1x4x256xf32>
    %cst = arith.constant dense<0.000000e+00> : vector<1x256xf32>
    %10 = vector.multi_reduction <add>, %9, %cst [1] : vector<1x4x256xf32> to vector<1x256xf32>
    %11 = vector.shape_cast %10 : vector<1x256xf32> to vector<1x1x256xf32>
    %12 = arith.mulf %4, %5 : vector<1x4x256xf32>
    %13 = arith.mulf %3, %6 : vector<1x4x256xf32>
    %14 = arith.subf %12, %13 : vector<1x4x256xf32>
    %cst_12 = arith.constant dense<0.000000e+00> : vector<1x256xf32>
    %15 = vector.multi_reduction <add>, %14, %cst_12 [1] : vector<1x4x256xf32> to vector<1x256xf32>
    %16 = vector.shape_cast %15 : vector<1x256xf32> to vector<1x1x256xf32>
    %c0_13 = arith.constant 0 : index
    %c0_14 = arith.constant 0 : index
    %c0_15 = arith.constant 0 : index
    %17 = vector.load %arg2[%c0_13, %c0_14, %c0_15] : memref<1x1x256xf32, #tpu.memory_space<vmem>>, vector<1x1x256xf32>
    %c0_16 = arith.constant 0 : index
    %c0_17 = arith.constant 0 : index
    %c0_18 = arith.constant 0 : index
    %18 = vector.load %arg9[%c0_16, %c0_17, %c0_18] : memref<1x1x256xf32, #tpu.memory_space<vmem>>, vector<1x1x256xf32>
    %19 = arith.mulf %17, %11 : vector<1x1x256xf32>
    %20 = arith.addf %18, %19 : vector<1x1x256xf32>
    %c0_19 = arith.constant 0 : index
    %c0_20 = arith.constant 0 : index
    %c0_21 = arith.constant 0 : index
    %21 = vector.load %arg9[%c0_19, %c0_20, %c0_21] : memref<1x1x256xf32, #tpu.memory_space<vmem>>, vector<1x1x256xf32>
    tpu.vector_store %arg9[%c0_19, %c0_20, %c0_21], %20 {strides = array<i32>} : memref<1x1x256xf32, #tpu.memory_space<vmem>>, vector<1x1x256xf32>,
    %c0_22 = arith.constant 0 : index
    %c0_23 = arith.constant 0 : index
    %c0_24 = arith.constant 0 : index
    %22 = vector.load %arg10[%c0_22, %c0_23, %c0_24] : memref<1x1x256xf32, #tpu.memory_space<vmem>>, vector<1x1x256xf32>
    %23 = arith.mulf %17, %16 : vector<1x1x256xf32>
    %24 = arith.addf %22, %23 : vector<1x1x256xf32>
    %c0_25 = arith.constant 0 : index
    %c0_26 = arith.constant 0 : index
    %c0_27 = arith.constant 0 : index
    %25 = vector.load %arg10[%c0_25, %c0_26, %c0_27] : memref<1x1x256xf32, #tpu.memory_space<vmem>>, vector<1x1x256xf32>
    tpu.vector_store %arg10[%c0_25, %c0_26, %c0_27], %24 {strides = array<i32>} : memref<1x1x256xf32, #tpu.memory_space<vmem>>, vector<1x1x256xf32>,
    return
  }
  func.func @transform_0(%arg0: i32, %arg1: i32) -> (i32, i32, i32) {
    %c0_i32 = arith.constant 0 : i32
    %c0_i32_0 = arith.constant 0 : i32
    %c0_i32_1 = arith.constant 0 : i32
    %c0_i32_2 = arith.constant 0 : i32
    return %c0_i32, %c0_i32_0, %c0_i32_1 : i32, i32, i32
  }
  func.func @transform_1(%arg0: i32, %arg1: i32) -> (i32, i32, i32) {
    %c0_i32 = arith.constant 0 : i32
    %c0_i32_0 = arith.constant 0 : i32
    %c0_i32_1 = arith.constant 0 : i32
    return %arg0, %c0_i32, %c0_i32_0 : i32, i32, i32
  }
  func.func @transform_2(%arg0: i32, %arg1: i32) -> (i32, i32, i32) {
    %c0_i32 = arith.constant 0 : i32
    %c0_i32_0 = arith.constant 0 : i32
    %c0_i32_1 = arith.constant 0 : i32
    return %arg0, %c0_i32, %c0_i32_0 : i32, i32, i32
  }
  func.func @transform_3(%arg0: i32, %arg1: i32) -> (i32, i32, i32) {
    %c0_i32 = arith.constant 0 : i32
    %c0_i32_0 = arith.constant 0 : i32
    return %arg0, %arg1, %c0_i32 : i32, i32, i32
  }
  func.func @transform_4(%arg0: i32, %arg1: i32) -> (i32, i32, i32) {
    %c0_i32 = arith.constant 0 : i32
    %c0_i32_0 = arith.constant 0 : i32
    return %arg0, %arg1, %c0_i32 : i32, i32, i32
  }
  func.func @transform_5(%arg0: i32, %arg1: i32) -> (i32, i32, i32) {
    %c0_i32 = arith.constant 0 : i32
    %c0_i32_0 = arith.constant 0 : i32
    return %arg0, %arg1, %c0_i32 : i32, i32, i32
  }
  func.func @transform_6(%arg0: i32, %arg1: i32) -> (i32, i32, i32) {
    %c0_i32 = arith.constant 0 : i32
    %c0_i32_0 = arith.constant 0 : i32
    return %arg0, %arg1, %c0_i32 : i32, i32, i32
  }
  func.func @transform_7(%arg0: i32, %arg1: i32) -> (i32, i32, i32) {
    %c0_i32 = arith.constant 0 : i32
    %c0_i32_0 = arith.constant 0 : i32
    %c0_i32_1 = arith.constant 0 : i32
    return %arg0, %c0_i32, %c0_i32_0 : i32, i32, i32
  }
  func.func @transform_8(%arg0: i32, %arg1: i32) -> (i32, i32, i32) {
    %c0_i32 = arith.constant 0 : i32
    %c0_i32_0 = arith.constant 0 : i32
    %c0_i32_1 = arith.constant 0 : i32
    return %arg0, %c0_i32, %c0_i32_0 : i32, i32, i32
  }
}

module attributes {stable_mosaic.version = 11 : i64} {
  func.func @_add_coilsum_kernel(%arg0: i32, %arg1: memref<1x1x256xf32, #tpu.memory_space<vmem>>, %arg2: memref<1x1x256xf32, #tpu.memory_space<vmem>>, %arg3: memref<1x1x256xf32, #tpu.memory_space<vmem>>, %arg4: memref<1x1x256xf32, #tpu.memory_space<vmem>>, %arg5: memref<1x1x256xf32, #tpu.memory_space<vmem>>, %arg6: memref<1x1x256xf32, #tpu.memory_space<vmem>>) attributes {dimension_semantics = [#tpu.dimension_semantics<parallel>], iteration_bounds = array<i64: 2>, scalar_prefetch = 0 : i64, scratch_operands = 0 : i64, tpu.core_type = #tpu.core_type<tc>, window_params = [{transform_indices = @transform_0, window_bounds = array<i64: 1, 1, 256>}, {transform_indices = @transform_1, window_bounds = array<i64: 1, 1, 256>}, {transform_indices = @transform_2, window_bounds = array<i64: 1, 1, 256>}, {transform_indices = @transform_3, window_bounds = array<i64: 1, 1, 256>}, {transform_indices = @transform_4, window_bounds = array<i64: 1, 1, 256>}, {transform_indices = @transform_5, window_bounds = array<i64: 1, 1, 256>}]} {
    %c0 = arith.constant 0 : index
    %c0_0 = arith.constant 0 : index
    %c0_1 = arith.constant 0 : index
    %0 = vector.load %arg1[%c0, %c0_0, %c0_1] : memref<1x1x256xf32, #tpu.memory_space<vmem>>, vector<1x1x256xf32>
    %c0_2 = arith.constant 0 : index
    %c0_3 = arith.constant 0 : index
    %c0_4 = arith.constant 0 : index
    %1 = vector.load %arg3[%c0_2, %c0_3, %c0_4] : memref<1x1x256xf32, #tpu.memory_space<vmem>>, vector<1x1x256xf32>
    %2 = arith.addf %0, %1 : vector<1x1x256xf32>
    %cst = arith.constant dense<0.000000e+00> : vector<1x256xf32>
    %3 = vector.multi_reduction <add>, %2, %cst [1] : vector<1x1x256xf32> to vector<1x256xf32>
    %4 = vector.shape_cast %3 : vector<1x256xf32> to vector<1x1x256xf32>
    %c0_5 = arith.constant 0 : index
    %c0_6 = arith.constant 0 : index
    %c0_7 = arith.constant 0 : index
    %5 = vector.load %arg5[%c0_5, %c0_6, %c0_7] : memref<1x1x256xf32, #tpu.memory_space<vmem>>, vector<1x1x256xf32>
    tpu.vector_store %arg5[%c0_5, %c0_6, %c0_7], %4 {strides = array<i32>} : memref<1x1x256xf32, #tpu.memory_space<vmem>>, vector<1x1x256xf32>,
    %c0_8 = arith.constant 0 : index
    %c0_9 = arith.constant 0 : index
    %c0_10 = arith.constant 0 : index
    %6 = vector.load %arg2[%c0_8, %c0_9, %c0_10] : memref<1x1x256xf32, #tpu.memory_space<vmem>>, vector<1x1x256xf32>
    %c0_11 = arith.constant 0 : index
    %c0_12 = arith.constant 0 : index
    %c0_13 = arith.constant 0 : index
    %7 = vector.load %arg4[%c0_11, %c0_12, %c0_13] : memref<1x1x256xf32, #tpu.memory_space<vmem>>, vector<1x1x256xf32>
    %8 = arith.addf %6, %7 : vector<1x1x256xf32>
    %cst_14 = arith.constant dense<0.000000e+00> : vector<1x256xf32>
    %9 = vector.multi_reduction <add>, %8, %cst_14 [1] : vector<1x1x256xf32> to vector<1x256xf32>
    %10 = vector.shape_cast %9 : vector<1x256xf32> to vector<1x1x256xf32>
    %c0_15 = arith.constant 0 : index
    %c0_16 = arith.constant 0 : index
    %c0_17 = arith.constant 0 : index
    %11 = vector.load %arg6[%c0_15, %c0_16, %c0_17] : memref<1x1x256xf32, #tpu.memory_space<vmem>>, vector<1x1x256xf32>
    tpu.vector_store %arg6[%c0_15, %c0_16, %c0_17], %10 {strides = array<i32>} : memref<1x1x256xf32, #tpu.memory_space<vmem>>, vector<1x1x256xf32>,
    return
  }
  func.func @transform_0(%arg0: i32) -> (i32, i32, i32) {
    %c0_i32 = arith.constant 0 : i32
    %c0_i32_0 = arith.constant 0 : i32
    %c0_i32_1 = arith.constant 0 : i32
    return %arg0, %c0_i32, %c0_i32_0 : i32, i32, i32
  }
  func.func @transform_1(%arg0: i32) -> (i32, i32, i32) {
    %c0_i32 = arith.constant 0 : i32
    %c0_i32_0 = arith.constant 0 : i32
    %c0_i32_1 = arith.constant 0 : i32
    return %arg0, %c0_i32, %c0_i32_0 : i32, i32, i32
  }
  func.func @transform_2(%arg0: i32) -> (i32, i32, i32) {
    %c0_i32 = arith.constant 0 : i32
    %c0_i32_0 = arith.constant 0 : i32
    %c0_i32_1 = arith.constant 0 : i32
    return %arg0, %c0_i32, %c0_i32_0 : i32, i32, i32
  }
  func.func @transform_3(%arg0: i32) -> (i32, i32, i32) {
    %c0_i32 = arith.constant 0 : i32
    %c0_i32_0 = arith.constant 0 : i32
    %c0_i32_1 = arith.constant 0 : i32
    return %arg0, %c0_i32, %c0_i32_0 : i32, i32, i32
  }
  func.func @transform_4(%arg0: i32) -> (i32, i32, i32) {
    %c0_i32 = arith.constant 0 : i32
    %c0_i32_0 = arith.constant 0 : i32
    %c0_i32_1 = arith.constant 0 : i32
    return %arg0, %c0_i32, %c0_i32_0 : i32, i32, i32
  }
  func.func @transform_5(%arg0: i32) -> (i32, i32, i32) {
    %c0_i32 = arith.constant 0 : i32
    %c0_i32_0 = arith.constant 0 : i32
    %c0_i32_1 = arith.constant 0 : i32
    return %arg0, %c0_i32, %c0_i32_0 : i32, i32, i32
  }
}

</mosaic_0001>

<bundles_post_ra>
// kernel: custom-call.3
= control target key start
LH: loop header
LB: loop body
LE: loop exit
PB: predicated region body
PF: predicated region fallthrough
CT: control target
= control target key end

     0   :  { %s59_s0 = inlined_call_operand.hbm [shape: c64[2,4,16,16], index: 0, kind: input, shape index: {}]   ;;  %s60_s1 = inlined_call_operand.vmem [shape: f32[2,4,16,16], index: 1, kind: output, shape index: {}]  }
   0x1   :  { %s2_s8 = scalar_lea.hbm %s59_s0, 2048 }
   0x2   :  { %3 = vsyncpa [#allocation0], 0  ;;  %s4_s11 = sshll.u32 %s60_s1, 4  ;;  %s34_s14 = scalar_lea.hbm %s59_s0, 4096  ;;  %s5_s11 = int_to_ptr.vmem [resolvable:$true] %s4_s11 }
   0x3   :  { %p11_p0 = scmp.ne.s32.totalorder %s2_s8, %s34_s14  ;;  %p13_p1 = scmp.lt.u32.totalorder %s2_s8, %s59_s0 }
   0x4   :  { %p14_p2 = scmp.lt.u32.totalorder %s34_s14, %s34_s14  ;;  %p16_p4 = scmp.lt.u32.totalorder %s34_s14, %s2_s8 }
   0x6   :  { %p15_p3 = por %p14_p2, %p13_p1 }
   0x8   :  { %p17_p5 = por %p16_p4, %p15_p3 }
   0xa   :  { %p18_p6 = pnand %p17_p5, %p11_p0 }
   0xc   :  { %21 = shalt.err (!%p18_p6)  }
   0xd   :  { %s22_s17 = scalar_lea.vmem %s5_s11, 2048  ;;  %p27_p8 = scmp.lt.s32.totalorder %s5_s11, %s5_s11 }
   0xe   :  { %p23_p7 = scmp.ne.s32.totalorder %s5_s11, %s22_s17  ;;  %p28_p9 = scmp.lt.s32.totalorder %s22_s17, %s22_s17 }
  0x10   :  { %p29_p10 = por %p28_p9, %p27_p8 }
  0x12   :  { %p30_p11 = pnand %p29_p10, %p23_p7 }
  0x14   :  { %33 = shalt.err (!%p30_p11)  }
  0x15   :  { %7 = dma.hbm_to_vmem [thread:$0]  %s2_s8, 2048, %s5_s11, [#allocation0] }
  0x16   :  { %35 = dma.done.wait [#allocation0], 2048  }
  0x17   :  { %36 = vsyncadd [#allocation0], 4294965248 }
  0x18   :  { %9 = vsyncpa [#allocation0], 1 }

// kernel: custom-call.1
= control target key start
LH: loop header
LB: loop body
LE: loop exit
PB: predicated region body
PF: predicated region fallthrough
CT: control target
= control target key end

     0   :  { %s59_s0 = inlined_call_operand.hbm [shape: c64[2,1,16,16], index: 0, kind: input, shape index: {}]   ;;  %s60_s1 = inlined_call_operand.vmem [shape: f32[2,1,16,16], index: 1, kind: output, shape index: {}]  }
   0x1   :  { %s2_s8 = scalar_lea.hbm %s59_s0, 512 }
   0x2   :  { %3 = vsyncpa [#allocation0], 0  ;;  %s4_s11 = sshll.u32 %s60_s1, 4  ;;  %s34_s14 = scalar_lea.hbm %s59_s0, 1024  ;;  %s5_s11 = int_to_ptr.vmem [resolvable:$true] %s4_s11 }
   0x3   :  { %p11_p0 = scmp.ne.s32.totalorder %s2_s8, %s34_s14  ;;  %p13_p1 = scmp.lt.u32.totalorder %s2_s8, %s59_s0 }
   0x4   :  { %p14_p2 = scmp.lt.u32.totalorder %s34_s14, %s34_s14  ;;  %p16_p4 = scmp.lt.u32.totalorder %s34_s14, %s2_s8 }
   0x6   :  { %p15_p3 = por %p14_p2, %p13_p1 }
   0x8   :  { %p17_p5 = por %p16_p4, %p15_p3 }
   0xa   :  { %p18_p6 = pnand %p17_p5, %p11_p0 }
   0xc   :  { %21 = shalt.err (!%p18_p6)  }
   0xd   :  { %s22_s17 = scalar_lea.vmem %s5_s11, 512  ;;  %p27_p8 = scmp.lt.s32.totalorder %s5_s11, %s5_s11 }
   0xe   :  { %p23_p7 = scmp.ne.s32.totalorder %s5_s11, %s22_s17  ;;  %p28_p9 = scmp.lt.s32.totalorder %s22_s17, %s22_s17 }
  0x10   :  { %p29_p10 = por %p28_p9, %p27_p8 }
  0x12   :  { %p30_p11 = pnand %p29_p10, %p23_p7 }
  0x14   :  { %33 = shalt.err (!%p30_p11)  }
  0x15   :  { %7 = dma.hbm_to_vmem [thread:$0]  %s2_s8, 512, %s5_s11, [#allocation0] }
  0x16   :  { %35 = dma.done.wait [#allocation0], 512  }
  0x17   :  { %36 = vsyncadd [#allocation0], 4294966784 }
  0x18   :  { %9 = vsyncpa [#allocation0], 1 }

// kernel: custom-call
= control target key start
LH: loop header
LB: loop body
LE: loop exit
PB: predicated region body
PF: predicated region fallthrough
CT: control target
= control target key end

     0   :  { %2 = vsyncpa [#allocation0], 0  ;;  %s61_s0 = inlined_call_operand.hbm [shape: c64[2,1,16,16], index: 0, kind: input, shape index: {}]   ;;  %s62_s1 = inlined_call_operand.vmem [shape: f32[2,1,16,16], index: 1, kind: output, shape index: {}]  }
   0x1   :  { %s3_s8 = sshll.u32 %s62_s1, 4  ;;  %s9_s11 = scalar_lea.hbm %s61_s0, 512  ;;  %s4_s8 = int_to_ptr.vmem [resolvable:$true] %s3_s8 }
   0x2   :  { %p10_p0 = scmp.ne.s32.totalorder %s61_s0, %s9_s11  ;;  %s11_s16 = scalar_lea.hbm %s61_s0, 1024 }
   0x3   :  { %p12_p1 = scmp.lt.u32.totalorder %s11_s16, %s9_s11  ;;  %p13_p2 = scmp.lt.u32.totalorder %s9_s11, %s61_s0 }
   0x5   :  { %p14_p3 = por %p13_p2, %p12_p1 }
   0x7   :  { %p15_p4 = pnand %p14_p3, %p10_p0 }
   0x9   :  { %18 = shalt.err (!%p15_p4)  }
   0xa   :  { %s19_s1 = scalar_lea.vmem %s4_s8, 512  ;;  %p24_p6 = scmp.lt.s32.totalorder %s4_s8, %s4_s8 }
   0xb   :  { %p20_p5 = scmp.ne.s32.totalorder %s4_s8, %s19_s1  ;;  %p25_p7 = scmp.lt.s32.totalorder %s19_s1, %s19_s1 }
   0xd   :  { %p26_p8 = por %p25_p7, %p24_p6 }
   0xf   :  { %p27_p9 = pnand %p26_p8, %p20_p5 }
  0x11   :  { %30 = shalt.err (!%p27_p9)  }
  0x12   :  { %6 = dma.hbm_to_vmem [thread:$0]  %s61_s0, 512, %s4_s8, [#allocation0] }
  0x13   :  { %31 = dma.done.wait [#allocation0], 512  }
  0x14   :  { %32 = vsyncadd [#allocation0], 4294966784 }
  0x15   :  { %8 = vsyncpa [#allocation0], 1 }

// kernel: custom-call.2
= control target key start
LH: loop header
LB: loop body
LE: loop exit
PB: predicated region body
PF: predicated region fallthrough
CT: control target
= control target key end

     0   :  { %2 = vsyncpa [#allocation0], 0  ;;  %s61_s0 = inlined_call_operand.hbm [shape: c64[2,4,16,16], index: 0, kind: input, shape index: {}]   ;;  %s62_s1 = inlined_call_operand.vmem [shape: f32[2,4,16,16], index: 1, kind: output, shape index: {}]  }
   0x1   :  { %s3_s8 = sshll.u32 %s62_s1, 4  ;;  %s9_s11 = scalar_lea.hbm %s61_s0, 2048  ;;  %s4_s8 = int_to_ptr.vmem [resolvable:$true] %s3_s8 }
   0x2   :  { %p10_p0 = scmp.ne.s32.totalorder %s61_s0, %s9_s11  ;;  %s11_s16 = scalar_lea.hbm %s61_s0, 4096 }
   0x3   :  { %p12_p1 = scmp.lt.u32.totalorder %s11_s16, %s9_s11  ;;  %p13_p2 = scmp.lt.u32.totalorder %s9_s11, %s61_s0 }
   0x5   :  { %p14_p3 = por %p13_p2, %p12_p1 }
   0x7   :  { %p15_p4 = pnand %p14_p3, %p10_p0 }
   0x9   :  { %18 = shalt.err (!%p15_p4)  }
   0xa   :  { %s19_s1 = scalar_lea.vmem %s4_s8, 2048  ;;  %p24_p6 = scmp.lt.s32.totalorder %s4_s8, %s4_s8 }
   0xb   :  { %p20_p5 = scmp.ne.s32.totalorder %s4_s8, %s19_s1  ;;  %p25_p7 = scmp.lt.s32.totalorder %s19_s1, %s19_s1 }
   0xd   :  { %p26_p8 = por %p25_p7, %p24_p6 }
   0xf   :  { %p27_p9 = pnand %p26_p8, %p20_p5 }
  0x11   :  { %30 = shalt.err (!%p27_p9)  }
  0x12   :  { %6 = dma.hbm_to_vmem [thread:$0]  %s61_s0, 2048, %s4_s8, [#allocation0] }
  0x13   :  { %31 = dma.done.wait [#allocation0], 2048  }
  0x14   :  { %32 = vsyncadd [#allocation0], 4294965248 }
  0x15   :  { %8 = vsyncpa [#allocation0], 1 }

// kernel: dc_step.6
= control target key start
LH: loop header
LB: loop body
LE: loop exit
PB: predicated region body
PF: predicated region fallthrough
CT: control target
= control target key end

     0   :  { %s732_s21 = smov 0   ;;  %s734_s22 = smov 0   ;;  %s786_s0 = inlined_call_operand.vmem [shape: f32[1,1,256], index: 0, kind: input, shape index: {}]   ;;  %s787_s1 = inlined_call_operand.vmem [shape: f32[2,1,256], index: 1, kind: input, shape index: {}]   ;;  %s788_s2 = inlined_call_operand.vmem [shape: f32[2,1,256], index: 2, kind: input, shape index: {}]   ;;  %s789_s3 = inlined_call_operand.vmem [shape: f32[2,4,256], index: 3, kind: input, shape index: {}]   ;;  %s790_s4 = inlined_call_operand.vmem [shape: f32[2,4,256], index: 4, kind: input, shape index: {}]   ;;  %s791_s5 = inlined_call_operand.vmem [shape: f32[2,4,256], index: 5, kind: output, shape index: {0}]   ;;  %s792_s6 = inlined_call_operand.vmem [shape: f32[2,4,256], index: 6, kind: output, shape index: {1}]  }
   0x1   :  { %s736_s23 = smov 0  }
   0x2 LB: > { %s29_s24 = sadd.s32 1, %s691_s22  ;;  %p630_p0 = scmp.ge.s32.totalorder %s695_s23, 1  ;;  %s695_s23 = sphi %s736_s23, %s17_s23   ;;  %s691_s22 = sphi %s734_s22, %s794_s22   ;;  %s687_s21 = sphi %s732_s21, %s793_s21  }
   0x3   : > { %p31_p1 = scmp.ge.s32.totalorder %s29_s24, 2  ;;  %p271_p2 = scmp.lt.s32.totalorder %s695_s23, 3 }
   0x5   : > { %s796_s24 = smov (%p31_p1, %s29_s24), 0  ;;  %p272_p3 = pnand %p630_p0, %p271_p2 }
   0x6   : > { %p335_p4 = scmp.lt.s32.totalorder (!%p272_p3), %s687_s21, 1  ;;  %v387_v0 = vlaneseq (!%p272_p3)  ;;  %v379_v2 = vld [vmem:[%s786_s0] sm:$0x3] (!%p272_p3) }
   0x7   : > { %275 = sbr.rel (%p272_p3) target bundleno = 31 (0x1f), region = 40 }
   0x8   : > { %v388_v1 = vshrl.u32 (!%p272_p3), %v387_v0, 7 }
   0xa   : > { %v389_v3 = vsub.s32 (!%p272_p3), 0, %v388_v1  ;;  %v393_v4 = vsub.s32 (!%p272_p3), 1, %v388_v1 }
   0xe   : > { %s798_s21 = smov (!%p335_p4, %s687_s21), 1 }
   0xf   : > { %s631_s25 = sshll.u32 %s798_s21, 1  ;;  %s750_s26 = sshll.u32 %s798_s21, 3 }
  0x10   : > { %s338_s7 = scalar_lea.vmem %s787_s1, %s631_s25  ;;  %s342_s10 = scalar_lea.vmem %s788_s2, %s631_s25 }
  0x11   : > { %s351_s13 = scalar_lea.vmem %s789_s3, %s750_s26  ;;  %s360_s16 = scalar_lea.vmem %s790_s4, %s750_s26  ;;  %v380_v5 = vld [vmem:[%s338_s7] sm:$0x3] }
  0x12   : > { %v382_v6 = vld [vmem:[%s342_s10] sm:$0x3]  ;;  %v381_v7 = vmul.f32 %v380_v5, %v379_v2  ;;  %s369_s19 = scalar_lea.vmem %s791_s5, %s750_s26  ;;  %s378_s25 = scalar_lea.vmem %s792_s6, %s750_s26 }
  0x13   : > { %v383_v8 = vmul.f32 %v382_v6, %v379_v2  ;;  %v384_v9 = vld [vmem:[%s351_s13] sm:$0xff] }
  0x14   : > { %v385_v10 = vld [vmem:[%s360_s16] sm:$0xff]  ;;  %v398_v11 = vcombine.high %v384_v9, %v384_v9  ;;  %v390_v13 = vrot.slane %v381_v7, %v389_v3  ;;  %v394_v14 = vrot.slane %v381_v7, %v393_v4 }
  0x15   : > { %v414_v12 = vcombine.high %v385_v10, %v385_v10  ;;  %v406_v15 = vrot.slane %v383_v8, %v389_v3  ;;  %v410_v16 = vrot.slane %v383_v8, %v393_v4 }
  0x16   : > { %v400_v17 = vmul.f32 %v390_v13, %v384_v9  ;;  %v401_v18 = vmul.f32 %v398_v11, %v394_v14  ;;  %v425_v21 = vmul.f32 %v390_v13, %v385_v10 }
  0x17   : > { %v416_v19 = vmul.f32 %v406_v15, %v385_v10  ;;  %v417_v20 = vmul.f32 %v414_v12, %v410_v16  ;;  %v426_v22 = vmul.f32 %v414_v12, %v394_v14  ;;  %v427_v23 = vmul.f32 %v406_v15, %v384_v9 }
  0x18   : > { %v428_v24 = vmul.f32 %v410_v16, %v398_v11 }
  0x19   : > { %v418_v25 = vsub.f32 %v400_v17, %v416_v19  ;;  %v419_v26 = vsub.f32 %v401_v18, %v417_v20  ;;  %v429_v27 = vadd.f32 %v427_v23, %v425_v21 }
  0x1a   : > { %v430_v28 = vadd.f32 %v428_v24, %v426_v22 }
  0x1b   : > { %v422_v29 = vcombine.low %v418_v25, %v419_v26 }
  0x1c   : > { %v433_v30 = vcombine.low %v429_v27, %v430_v28 }
  0x1d   : > { %424 = vst [vmem:[%s369_s19] sm:$0xff] %v422_v29 }
  0x1e   : > { %435 = vst [vmem:[%s378_s25] sm:$0xff] %v433_v30 }
  0x1f PF: > { %s17_s23 = sadd.s32 1, %s695_s23   ;;  %s793_s21 = smov %s691_s22 }
  0x20   : > { %p14_p5 = scmp.ge.s32.totalorder %s17_s23, 4   ;;  %s794_s22 = smov %s796_s24 }
  0x22   :  { %16 = sbr.rel (!%p14_p5) target bundleno = 2 (0x2), region = 91 }

// kernel: dc_step.7
= control target key start
LH: loop header
LB: loop body
LE: loop exit
PB: predicated region body
PF: predicated region fallthrough
CT: control target
= control target key end

     0   :  { %s567_s15 = smov 0   ;;  %s569_s16 = smov 0   ;;  %s606_s0 = inlined_call_operand.vmem [shape: f32[1,1,256], index: 0, kind: input, shape index: {}]   ;;  %s607_s1 = inlined_call_operand.vmem [shape: f32[2,4,256], index: 1, kind: input, shape index: {}]   ;;  %s608_s2 = inlined_call_operand.vmem [shape: f32[2,4,256], index: 2, kind: input, shape index: {}]   ;;  %s609_s3 = inlined_call_operand.vmem [shape: f32[2,4,256], index: 3, kind: output, shape index: {0}]   ;;  %s610_s4 = inlined_call_operand.vmem [shape: f32[2,4,256], index: 4, kind: output, shape index: {1}]  }
   0x1   :  { %s571_s17 = smov 0  }
   0x2 LB: > { %s27_s18 = sadd.s32 1, %s536_s16  ;;  %p479_p0 = scmp.ge.s32.totalorder %s540_s17, 1  ;;  %s540_s17 = sphi %s571_s17, %s15_s17   ;;  %s536_s16 = sphi %s569_s16, %s612_s16   ;;  %s532_s15 = sphi %s567_s15, %s611_s15  }
   0x3   : > { %p29_p1 = scmp.ge.s32.totalorder %s27_s18, 2  ;;  %p203_p2 = scmp.lt.s32.totalorder %s540_s17, 3 }
   0x5   : > { %s614_s18 = smov (%p29_p1, %s27_s18), 0  ;;  %p204_p3 = pnand %p479_p0, %p203_p2 }
   0x6   : > { %p255_p4 = scmp.lt.s32.totalorder (!%p204_p3), %s532_s15, 1  ;;  %v294_v0 = vlaneseq (!%p204_p3)  ;;  %v291_v2 = vld [vmem:[%s606_s0] sm:$0x3] (!%p204_p3) }
   0x7   : > { %207 = sbr.rel (%p204_p3) target bundleno = 22 (0x16), region = 32 }
   0x8   : > { %v295_v1 = vshrl.u32 (!%p204_p3), %v294_v0, 7 }
   0xa   : > { %v296_v3 = vsub.s32 (!%p204_p3), 0, %v295_v1  ;;  %v300_v4 = vsub.s32 (!%p204_p3), 1, %v295_v1 }
   0xc   : > { %v297_v5 = vrot.slane (!%p204_p3), %v291_v2, %v296_v3  ;;  %v301_v6 = vrot.slane (!%p204_p3), %v291_v2, %v300_v4 }
   0xe   : > { %s616_s15 = smov (!%p255_p4, %s532_s15), 1  ;;  %v302_v9 = vcombine.low %v297_v5, %v301_v6 }
   0xf   : > { %s490_s21 = sshll.u32 %s616_s15, 3 }
  0x10   : > { %s263_s24 = scalar_lea.vmem %s607_s1, %s490_s21  ;;  %s272_s27 = scalar_lea.vmem %s608_s2, %s490_s21 }
  0x11   : > { %v292_v7 = vld [vmem:[%s263_s24] sm:$0xff]  ;;  %s281_s30 = scalar_lea.vmem %s609_s3, %s490_s21  ;;  %s290_s7 = scalar_lea.vmem %s610_s4, %s490_s21 }
  0x12   : > { %v306_v8 = vld [vmem:[%s272_s27] sm:$0xff]  ;;  %v304_v10 = vmul.f32 %v302_v9, %v292_v7 }
  0x13   : > { %v307_v11 = vmul.f32 %v306_v8, %v302_v9 }
  0x14   : > { %305 = vst [vmem:[%s281_s30] sm:$0xff] %v304_v10 }
  0x15   : > { %308 = vst [vmem:[%s290_s7] sm:$0xff] %v307_v11 }
  0x16 PF: > { %s15_s17 = sadd.s32 1, %s540_s17   ;;  %s611_s15 = smov %s536_s16 }
  0x17   : > { %p12_p5 = scmp.ge.s32.totalorder %s15_s17, 4   ;;  %s612_s16 = smov %s614_s18 }
  0x19   :  { %14 = sbr.rel (!%p12_p5) target bundleno = 2 (0x2), region = 77 }

// kernel: dc_step.10
= control target key start
LH: loop header
LB: loop body
LE: loop exit
PB: predicated region body
PF: predicated region fallthrough
CT: control target
= control target key end

     0   :  { %s765_s21 = smov 0   ;;  %s767_s22 = smov 0   ;;  %s835_s0 = inlined_call_operand.vmem [shape: f32[1,1,256], index: 0, kind: input, shape index: {}]   ;;  %s836_s1 = inlined_call_operand.vmem [shape: f32[2,4,256], index: 1, kind: input, shape index: {}]   ;;  %s837_s2 = inlined_call_operand.vmem [shape: f32[2,4,256], index: 2, kind: input, shape index: {}]   ;;  %s838_s3 = inlined_call_operand.vmem [shape: f32[2,4,256], index: 3, kind: input, shape index: {}]   ;;  %s839_s4 = inlined_call_operand.vmem [shape: f32[2,4,256], index: 4, kind: input, shape index: {}]   ;;  %s840_s5 = inlined_call_operand.vmem [shape: f32[2,1,256], index: 5, kind: output, shape index: {0}]   ;;  %s841_s6 = inlined_call_operand.vmem [shape: f32[2,1,256], index: 6, kind: output, shape index: {1}]  }
   0x1   :  { %s769_s23 = smov 0  }
   0x2 LB: > { %s29_s24 = sadd.s32 1, %s722_s22  ;;  %p661_p0 = scmp.ge.s32.totalorder %s726_s23, 1  ;;  %s726_s23 = sphi %s769_s23, %s17_s23   ;;  %s722_s22 = sphi %s767_s22, %s845_s22   ;;  %s718_s21 = sphi %s765_s21, %s844_s21  }
   0x3   : > { %p31_p1 = scmp.ge.s32.totalorder %s29_s24, 2  ;;  %p281_p2 = scmp.lt.s32.totalorder %s726_s23, 3 }
   0x5   : > { %s847_s24 = smov (%p31_p1, %s29_s24), 0  ;;  %p282_p3 = pnand %p661_p0, %p281_p2 }
   0x6   : > { %p345_p4 = scmp.lt.s32.totalorder (!%p282_p3), %s718_s21, 1  ;;  %v393_v0 = vlaneseq (!%p282_p3)  ;;  %v728_v6 = vmov (!%p282_p3), 0.0   ;;  %vm409_vm1 = vcmask (!%p282_p3), 1043456   ;;  %v729_v25 = vmov (!%p282_p3), 1966171168  }
   0x7   : > { %285 = sbr.rel (%p282_p3) target bundleno = 51 (0x33), region = 40  ;;  %v450_v26 = vunpack.c.l.s4 (!%p282_p3), %v729_v25  ;;  %v444_v52 = vld [vmem:[%s835_s0] sm:$0x3] (!%p282_p3) }
   0x8   : > { %vm789_vm0 = vcmp.lt.s32.totalorder (!%p282_p3), %v393_v0, 256  ;;  %v453_v36 = vshrl.u32 (!%p282_p3), %v393_v0, 7 }
   0x9   : > { %v451_v35 = vunpack.c.0.s8 (!%p282_p3), %v450_v26 }
   0xb   : > { %v454_v46 = vsub.s32 (!%p282_p3), %v451_v35, %v453_v36 }
   0xe   : > { %s849_s21 = smov (!%p345_p4, %s718_s21), 1 }
   0xf   : > { %s674_s25 = sshll.u32 %s849_s21, 3  ;;  %s670_s26 = sshll.u32 %s849_s21, 1 }
  0x10   : > { %s353_s29 = scalar_lea.vmem %s836_s1, %s674_s25  ;;  %s362_s8 = scalar_lea.vmem %s837_s2, %s674_s25 }
  0x11   : > { %s371_s11 = scalar_lea.vmem %s838_s3, %s674_s25  ;;  %s380_s14 = scalar_lea.vmem %s839_s4, %s674_s25  ;;  %v399_v2 = vld [vmem:[%s353_s29] sm:$0xff] }
  0x12   : > { %v400_v3 = vld [vmem:[%s362_s8] sm:$0xff]  ;;  %s802_s17 = scalar_lea.vmem %s840_s5, %s670_s26  ;;  %s807_s20 = scalar_lea.vmem %s841_s6, %s670_s26 }
  0x13   : > { %v401_v4 = vld [vmem:[%s371_s11] sm:$0xff]  ;;  %397 = vst.msk [vmem:[%s802_s17] sm:$0x3] %vm789_vm0, %v728_v6  ;;  %398 = vst.msk [vmem:[%s807_s20] sm:$0x3] %vm789_vm0, %v728_v6 }
  0x14   : > { %v402_v5 = vld [vmem:[%s380_s14] sm:$0xff]  ;;  %v403_v7 = vmul.f32 %v401_v4, %v399_v2  ;;  %v424_v9 = vmul.f32 %v401_v4, %v400_v3 }
  0x15   : > { %v404_v8 = vmul.f32 %v402_v5, %v400_v3  ;;  %v425_v10 = vmul.f32 %v402_v5, %v399_v2 }
  0x17   : > { %v405_v11 = vadd.f32 %v404_v8, %v403_v7  ;;  %v426_v12 = vsub.f32 %v424_v9, %v425_v10 }
  0x19   : > { %v407_v13 = vcombine.high %v405_v11, %v405_v11  ;;  %v410_v14 = vsel %vm409_vm1, %v405_v11, 0.0  ;;  %v428_v15 = vcombine.high %v426_v12, %v426_v12  ;;  %v430_v16 = vsel %vm409_vm1, %v426_v12, 0.0 }
  0x1a   : > { %v411_v17 = vrot.slane %v410_v14, 4  ;;  %v431_v18 = vrot.slane %v430_v16, 4  ;;  %v445_v55 = vld [vmem:[%s802_s17] sm:$0x3] }
  0x1b   : > { %v417_v19 = vsel %vm409_vm1, %v407_v13, 0.0  ;;  %v437_v20 = vsel %vm409_vm1, %v428_v15, 0.0  ;;  %v471_v56 = vld [vmem:[%s807_s20] sm:$0x3] }
  0x1c   : > { %v412_v21 = vadd.f32 %v411_v17, %v410_v14  ;;  %v418_v22 = vrot.slane %v417_v19, 4  ;;  %v432_v23 = vadd.f32 %v431_v18, %v430_v16  ;;  %v438_v24 = vrot.slane %v437_v20, 4 }
  0x1e   : > { %v413_v27 = vrot.slane %v412_v21, 2  ;;  %v419_v28 = vadd.f32 %v418_v22, %v417_v19  ;;  %v433_v29 = vrot.slane %v432_v23, 2  ;;  %v439_v30 = vadd.f32 %v438_v24, %v437_v20 }
  0x20   : > { %v414_v31 = vadd.f32 %v413_v27, %v412_v21  ;;  %v420_v32 = vrot.slane %v419_v28, 2  ;;  %v434_v33 = vadd.f32 %v433_v29, %v432_v23  ;;  %v440_v34 = vrot.slane %v439_v30, 2 }
  0x22   : > { %v415_v37 = vrot.slane %v414_v31, 1  ;;  %v421_v38 = vadd.f32 %v420_v32, %v419_v28  ;;  %v435_v39 = vrot.slane %v434_v33, 1  ;;  %v441_v40 = vadd.f32 %v440_v34, %v439_v30 }
  0x24   : > { %v416_v41 = vadd.f32 %v415_v37, %v414_v31  ;;  %v422_v42 = vrot.slane %v421_v38, 1  ;;  %v436_v43 = vadd.f32 %v435_v39, %v434_v33  ;;  %v442_v44 = vrot.slane %v441_v40, 1 }
  0x26   : > { %v423_v45 = vadd.f32 %v422_v42, %v421_v38  ;;  %v443_v47 = vadd.f32 %v442_v44, %v441_v40 }
  0x28   : > { %v448_v48 = vcombine.low %v416_v41, %v423_v45  ;;  %v474_v49 = vcombine.low %v436_v43, %v443_v47 }
  0x2a   : > { %v455_v50 = vrot.slane %v448_v48, %v454_v46  ;;  %v481_v51 = vrot.slane %v474_v49, %v454_v46 }
  0x2c   : > { %v462_v53 = vrot.slane %v455_v50, %v454_v46  ;;  %v488_v54 = vrot.slane %v481_v51, %v454_v46 }
  0x2e   : > { %v464_v57 = vmul.f32 %v462_v53, %v444_v52  ;;  %v490_v58 = vmul.f32 %v488_v54, %v444_v52 }
  0x30   : > { %v465_v59 = vadd.f32 %v464_v57, %v445_v55  ;;  %v491_v60 = vadd.f32 %v490_v58, %v471_v56 }
  0x32   : > { %470 = vst.msk [vmem:[%s802_s17] sm:$0x3] %vm789_vm0, %v465_v59  ;;  %492 = vst.msk [vmem:[%s807_s20] sm:$0x3] %vm789_vm0, %v491_v60 }
  0x33 PF: > { %s17_s23 = sadd.s32 1, %s726_s23   ;;  %s844_s21 = smov %s722_s22 }
  0x34   : > { %p14_p5 = scmp.ge.s32.totalorder %s17_s23, 4   ;;  %s845_s22 = smov %s847_s24 }
  0x36   :  { %16 = sbr.rel (!%p14_p5) target bundleno = 2 (0x2), region = 95 }

// kernel: custom-call.6
= control target key start
LH: loop header
LB: loop body
LE: loop exit
PB: predicated region body
PF: predicated region fallthrough
CT: control target
= control target key end

     0   :  { %s126_s0 = inlined_call_operand.vmem [shape: f32[2,1,16,16], index: 0, kind: input, shape index: {}]   ;;  %s127_s1 = inlined_call_operand.vmem [shape: f32[2,1,16,16], index: 1, kind: input, shape index: {}]   ;;  %s128_s2 = inlined_call_operand.hbm [shape: c64[2,1,16,16], index: 2, kind: output, shape index: {}]  }
   0x1   :  { %s87_s11 = scalar_lea.hbm %s128_s2, 512 }
   0x2   :  { %4 = vsyncpa [#allocation0], 0  ;;  %s5_s14 = sshll.u32 %s126_s0, 4  ;;  %s6_s14 = int_to_ptr.vmem [resolvable:$true] %s5_s14 }
   0x3   :  { %s18_s15 = scalar_lea.vmem %s6_s14, 512  ;;  %p23_p1 = scmp.lt.s32.totalorder %s6_s14, %s6_s14 }
   0x4   :  { %p19_p0 = scmp.ne.s32.totalorder %s6_s14, %s18_s15  ;;  %p24_p2 = scmp.lt.s32.totalorder %s18_s15, %s18_s15 }
   0x6   :  { %p25_p3 = por %p24_p2, %p23_p1 }
   0x8   :  { %p26_p4 = pnand %p25_p3, %p19_p0 }
   0xa   :  { %29 = shalt.err (!%p26_p4)  }
   0xb   :  { %p31_p5 = scmp.ne.s32.totalorder %s128_s2, %s87_s11  ;;  %s32_s0 = scalar_lea.hbm %s128_s2, 1024 }
   0xc   :  { %p33_p6 = scmp.lt.u32.totalorder %s32_s0, %s87_s11  ;;  %p34_p7 = scmp.lt.u32.totalorder %s87_s11, %s128_s2 }
   0xe   :  { %p35_p8 = por %p34_p7, %p33_p6 }
  0x10   :  { %p36_p9 = pnand %p35_p8, %p31_p5 }
  0x12   :  { %39 = shalt.err (!%p36_p9)  }
  0x13   :  { %8 = dma.vmem_to_hbm [thread:$0]  %s6_s14, 512, %s128_s2, [#allocation0] }
  0x14   :  { %65 = dma.done.wait [#allocation0], 512  }
  0x15   :  { %66 = vsyncadd [#allocation0], 4294966784 }
  0x16   :  { %10 = vsyncpa [#allocation0], 1 }
  0x17   :  { %11 = vsyncpa [#allocation1], 0  ;;  %s12_s28 = sshll.u32 %s127_s1, 4  ;;  %s13_s28 = int_to_ptr.vmem [resolvable:$true] %s12_s28 }
  0x18   :  { %s40_s29 = scalar_lea.vmem %s13_s28, 512  ;;  %p45_p11 = scmp.lt.s32.totalorder %s13_s28, %s13_s28 }
  0x19   :  { %p41_p10 = scmp.ne.s32.totalorder %s13_s28, %s40_s29  ;;  %p46_p12 = scmp.lt.s32.totalorder %s40_s29, %s40_s29 }
  0x1b   :  { %p47_p13 = por %p46_p12, %p45_p11 }
  0x1d   :  { %p48_p0 = pnand %p47_p13, %p41_p10 }
  0x1f   :  { %51 = shalt.err (!%p48_p0)  }
  0x20   :  { %p53_p1 = scmp.ne.s32.totalorder %s87_s11, %s32_s0  ;;  %p56_p2 = scmp.lt.u32.totalorder %s32_s0, %s32_s0 }
  0x22   :  { %p57_p3 = por %p56_p2, %p34_p7 }
  0x24   :  { %p59_p4 = por %p57_p3, %p33_p6 }
  0x26   :  { %p60_p5 = pnand %p59_p4, %p53_p1 }
  0x28   :  { %63 = shalt.err (!%p60_p5)  }
  0x29   :  { %15 = dma.vmem_to_hbm [thread:$0]  %s13_s28, 512, %s87_s11, [#allocation1] }
  0x2a   :  { %67 = dma.done.wait [#allocation1], 512  }
  0x2b   :  { %68 = vsyncadd [#allocation1], 4294966784 }
  0x2c   :  { %17 = vsyncpa [#allocation1], 1 }

// kernel: dc_step.8
= control target key start
LH: loop header
LB: loop body
LE: loop exit
PB: predicated region body
PF: predicated region fallthrough
CT: control target
= control target key end

     0   :  { %s889_s27 = smov 0   ;;  %s891_s28 = smov 0   ;;  %s965_s0 = inlined_call_operand.vmem [shape: f32[1,1,256], index: 0, kind: input, shape index: {}]   ;;  %s966_s1 = inlined_call_operand.vmem [shape: f32[2,1,256], index: 1, kind: input, shape index: {}]   ;;  %s967_s2 = inlined_call_operand.vmem [shape: f32[2,1,256], index: 2, kind: input, shape index: {}]   ;;  %s968_s3 = inlined_call_operand.vmem [shape: f32[2,4,256], index: 3, kind: input, shape index: {}]   ;;  %s969_s4 = inlined_call_operand.vmem [shape: f32[2,4,256], index: 4, kind: input, shape index: {}]   ;;  %s970_s5 = inlined_call_operand.vmem [shape: f32[2,4,256], index: 5, kind: input, shape index: {}]   ;;  %s971_s6 = inlined_call_operand.vmem [shape: f32[2,4,256], index: 6, kind: input, shape index: {}]   ;;  %s972_s7 = inlined_call_operand.vmem [shape: f32[2,1,256], index: 7, kind: output, shape index: {0}]   ;;  %s973_s8 = inlined_call_operand.vmem [shape: f32[2,1,256], index: 8, kind: output, shape index: {1}]  }
   0x1   :  { %s893_s29 = smov 0  }
   0x2 LB: > { %s31_s30 = sadd.s32 1, %s837_s28  ;;  %p775_p0 = scmp.ge.s32.totalorder %s841_s29, 1  ;;  %s841_s29 = sphi %s893_s29, %s19_s29   ;;  %s837_s28 = sphi %s891_s28, %s977_s28   ;;  %s833_s27 = sphi %s889_s27, %s976_s27  }
   0x3   : > { %p33_p1 = scmp.ge.s32.totalorder %s31_s30, 2  ;;  %p349_p2 = scmp.lt.s32.totalorder %s841_s29, 3 }
   0x5   : > { %s979_s30 = smov (%p33_p1, %s31_s30), 0  ;;  %p350_p3 = pnand %p775_p0, %p349_p2 }
   0x6   : > { %p425_p4 = scmp.lt.s32.totalorder (!%p350_p3), %s833_s27, 1  ;;  %v482_v0 = vlaneseq (!%p350_p3)  ;;  %vm499_vm1 = vcmask (!%p350_p3), 1043456   ;;  %v843_v26 = vmov (!%p350_p3), 1966171168   ;;  %v534_v53 = vld [vmem:[%s965_s0] sm:$0x3] (!%p350_p3) }
   0x7   : > { %353 = sbr.rel (%p350_p3) target bundleno = 52 (0x34), region = 48  ;;  %v540_v27 = vunpack.c.l.s4 (!%p350_p3), %v843_v26 }
   0x8   : > { %vm913_vm0 = vcmp.lt.s32.totalorder (!%p350_p3), %v482_v0, 256  ;;  %v543_v37 = vshrl.u32 (!%p350_p3), %v482_v0, 7 }
   0x9   : > { %v541_v36 = vunpack.c.0.s8 (!%p350_p3), %v540_v27 }
   0xb   : > { %v544_v47 = vsub.s32 (!%p350_p3), %v541_v36, %v543_v37 }
   0xe   : > { %s981_s27 = smov (!%p425_p4, %s833_s27), 1 }
   0xf   : > { %s776_s9 = sshll.u32 %s981_s27, 1  ;;  %s790_s10 = sshll.u32 %s981_s27, 3 }
  0x10   : > { %s428_s13 = scalar_lea.vmem %s966_s1, %s776_s9  ;;  %s441_s16 = scalar_lea.vmem %s968_s3, %s790_s10 }
  0x11   : > { %s450_s19 = scalar_lea.vmem %s969_s4, %s790_s10  ;;  %s459_s22 = scalar_lea.vmem %s970_s5, %s790_s10  ;;  %v481_v2 = vld [vmem:[%s428_s13] sm:$0x3] }
  0x12   : > { %v489_v3 = vld [vmem:[%s441_s16] sm:$0xff]  ;;  %s468_s25 = scalar_lea.vmem %s971_s6, %s790_s10  ;;  %s929_s11 = scalar_lea.vmem %s972_s7, %s776_s9 }
  0x13   : > { %v490_v4 = vld [vmem:[%s450_s19] sm:$0xff]  ;;  %486 = vst.msk [vmem:[%s929_s11] sm:$0x3] %vm913_vm0, %v481_v2  ;;  %s432_s14 = scalar_lea.vmem %s967_s2, %s776_s9  ;;  %s940_s16 = scalar_lea.vmem %s973_s8, %s776_s9 }
  0x14   : > { %v491_v5 = vld [vmem:[%s459_s22] sm:$0xff] }
  0x15   : > { %v492_v6 = vld [vmem:[%s468_s25] sm:$0xff]  ;;  %v493_v7 = vmul.f32 %v491_v5, %v489_v3  ;;  %v514_v8 = vmul.f32 %v491_v5, %v490_v4 }
  0x16   : > { %v494_v9 = vmul.f32 %v492_v6, %v490_v4  ;;  %v515_v10 = vmul.f32 %v492_v6, %v489_v3  ;;  %v487_v11 = vld [vmem:[%s432_s14] sm:$0x3] }
  0x17   : > { %488 = vst.msk [vmem:[%s940_s16] sm:$0x3] %vm913_vm0, %v487_v11 }
  0x18   : > { %v495_v12 = vadd.f32 %v494_v9, %v493_v7  ;;  %v516_v13 = vsub.f32 %v514_v8, %v515_v10 }
  0x1a   : > { %v497_v14 = vcombine.high %v495_v12, %v495_v12  ;;  %v500_v15 = vsel %vm499_vm1, %v495_v12, 0.0  ;;  %v518_v16 = vcombine.high %v516_v13, %v516_v13  ;;  %v520_v17 = vsel %vm499_vm1, %v516_v13, 0.0  ;;  %v535_v56 = vld [vmem:[%s929_s11] sm:$0x3] }
  0x1b   : > { %v501_v18 = vrot.slane %v500_v15, 4  ;;  %v521_v19 = vrot.slane %v520_v17, 4 }
  0x1c   : > { %v507_v20 = vsel %vm499_vm1, %v497_v14, 0.0  ;;  %v527_v21 = vsel %vm499_vm1, %v518_v16, 0.0 }
  0x1d   : > { %v502_v22 = vadd.f32 %v501_v18, %v500_v15  ;;  %v508_v23 = vrot.slane %v507_v20, 4  ;;  %v522_v24 = vadd.f32 %v521_v19, %v520_v17  ;;  %v528_v25 = vrot.slane %v527_v21, 4 }
  0x1e   : > { %v561_v57 = vld [vmem:[%s940_s16] sm:$0x3] }
  0x1f   : > { %v503_v28 = vrot.slane %v502_v22, 2  ;;  %v509_v29 = vadd.f32 %v508_v23, %v507_v20  ;;  %v523_v30 = vrot.slane %v522_v24, 2  ;;  %v529_v31 = vadd.f32 %v528_v25, %v527_v21 }
  0x21   : > { %v504_v32 = vadd.f32 %v503_v28, %v502_v22  ;;  %v510_v33 = vrot.slane %v509_v29, 2  ;;  %v524_v34 = vadd.f32 %v523_v30, %v522_v24  ;;  %v530_v35 = vrot.slane %v529_v31, 2 }
  0x23   : > { %v505_v38 = vrot.slane %v504_v32, 1  ;;  %v511_v39 = vadd.f32 %v510_v33, %v509_v29  ;;  %v525_v40 = vrot.slane %v524_v34, 1  ;;  %v531_v41 = vadd.f32 %v530_v35, %v529_v31 }
  0x25   : > { %v506_v42 = vadd.f32 %v505_v38, %v504_v32  ;;  %v512_v43 = vrot.slane %v511_v39, 1  ;;  %v526_v44 = vadd.f32 %v525_v40, %v524_v34  ;;  %v532_v45 = vrot.slane %v531_v41, 1 }
  0x27   : > { %v513_v46 = vadd.f32 %v512_v43, %v511_v39  ;;  %v533_v48 = vadd.f32 %v532_v45, %v531_v41 }
  0x29   : > { %v538_v49 = vcombine.low %v506_v42, %v513_v46  ;;  %v564_v50 = vcombine.low %v526_v44, %v533_v48 }
  0x2b   : > { %v545_v51 = vrot.slane %v538_v49, %v544_v47  ;;  %v571_v52 = vrot.slane %v564_v50, %v544_v47 }
  0x2d   : > { %v552_v54 = vrot.slane %v545_v51, %v544_v47  ;;  %v578_v55 = vrot.slane %v571_v52, %v544_v47 }
  0x2f   : > { %v554_v58 = vmul.f32 %v552_v54, %v534_v53  ;;  %v580_v59 = vmul.f32 %v578_v55, %v534_v53 }
  0x31   : > { %v555_v60 = vadd.f32 %v554_v58, %v535_v56  ;;  %v581_v61 = vadd.f32 %v580_v59, %v561_v57 }
  0x33   : > { %560 = vst.msk [vmem:[%s929_s11] sm:$0x3] %vm913_vm0, %v555_v60  ;;  %582 = vst.msk [vmem:[%s940_s16] sm:$0x3] %vm913_vm0, %v581_v61 }
  0x34 PF: > { %s19_s29 = sadd.s32 1, %s841_s29   ;;  %s976_s27 = smov %s837_s28 }
  0x35   : > { %p16_p5 = scmp.ge.s32.totalorder %s19_s29, 4   ;;  %s977_s28 = smov %s979_s30 }
  0x37   :  { %18 = sbr.rel (!%p16_p5) target bundleno = 2 (0x2), region = 109 }

// kernel: dc_step.11
= control target key start
LH: loop header
LB: loop body
LE: loop exit
PB: predicated region body
PF: predicated region fallthrough
CT: control target
= control target key end

     0   :  { %s475_s18 = smov 0   ;;  %s498_s0 = inlined_call_operand.vmem [shape: f32[2,1,256], index: 0, kind: input, shape index: {}]   ;;  %s499_s1 = inlined_call_operand.vmem [shape: f32[2,1,256], index: 1, kind: input, shape index: {}]   ;;  %s500_s2 = inlined_call_operand.vmem [shape: f32[2,1,256], index: 2, kind: input, shape index: {}]   ;;  %s501_s3 = inlined_call_operand.vmem [shape: f32[2,1,256], index: 3, kind: input, shape index: {}]   ;;  %s502_s4 = inlined_call_operand.vmem [shape: f32[2,1,256], index: 4, kind: output, shape index: {0}]   ;;  %s503_s5 = inlined_call_operand.vmem [shape: f32[2,1,256], index: 5, kind: output, shape index: {1}]  }
   0x1 LB: > { %s416_s19 = sadd.s32 4294967295, %s443_s18   ;;  %p420_p0 = scmp.ge.s32.totalorder %s443_s18, 1  ;;  %s443_s18 = sphi %s475_s18, %s16_s18  }
   0x2   : > { %p216_p1 = scmp.lt.s32.totalorder %s443_s18, 3 }
   0x4   : > { %p217_p2 = pnand %p420_p0, %p216_p1 }
   0x5   : > { %p258_p3 = scmp.lt.s32.totalorder (!%p217_p2), %s416_s19, 1  ;;  %v286_v0 = vlaneseq (!%p217_p2) }
   0x6   : > { %220 = sbr.rel (%p217_p2) target bundleno = 23 (0x17), region = 36 }
   0x7   : > { %vm288_vm0 = vcmp.lt.s32.totalorder (!%p217_p2), %v286_v0, 256 }
   0xd   : > { %s505_s19 = smov (!%p258_p3, %s416_s19), 1 }
   0xe   : > { %s421_s20 = sshll.u32 %s505_s19, 1 }
   0xf   : > { %s261_s23 = scalar_lea.vmem %s498_s0, %s421_s20  ;;  %s269_s26 = scalar_lea.vmem %s500_s2, %s421_s20 }
  0x10   : > { %s277_s29 = scalar_lea.vmem %s502_s4, %s421_s20  ;;  %v282_v1 = vld [vmem:[%s261_s23] sm:$0x3]  ;;  %s265_s7 = scalar_lea.vmem %s499_s1, %s421_s20 }
  0x11   : > { %v283_v2 = vld [vmem:[%s269_s26] sm:$0x3]  ;;  %s273_s10 = scalar_lea.vmem %s501_s3, %s421_s20  ;;  %s281_s13 = scalar_lea.vmem %s503_s5, %s421_s20 }
  0x12   : > { %v284_v3 = vadd.f32 %v283_v2, %v282_v1  ;;  %v291_v4 = vld [vmem:[%s265_s7] sm:$0x3] }
  0x13   : > { %v292_v5 = vld [vmem:[%s273_s10] sm:$0x3] }
  0x14   : > { %290 = vst.msk [vmem:[%s277_s29] sm:$0x3] %vm288_vm0, %v284_v3  ;;  %v293_v6 = vadd.f32 %v292_v5, %v291_v4 }
  0x16   : > { %295 = vst.msk [vmem:[%s281_s13] sm:$0x3] %vm288_vm0, %v293_v6 }
  0x17 PF: > { %s16_s18 = sadd.s32 1, %s443_s18  }
  0x18   : > { %p13_p4 = scmp.ge.s32.totalorder %s16_s18, 4  }
  0x1a   :  { %15 = sbr.rel (!%p13_p4) target bundleno = 1 (0x1), region = 87 }

</bundles_post_ra>
